<compile_context>
chip_gen: v7x
topology: tpu7x:2x2x1
jax: 0.10.0
libtpu: 0.0.40
codegen_flags: <defaults>
</compile_context>

<pallas_src>
import functools
import math

import jax
import jax.numpy as jnp
from jax.experimental import pallas as pl
from jax.experimental.pallas import tpu as pltpu


# ---------------------------------------------------------------------------
# In-kernel helpers
# ---------------------------------------------------------------------------
def _layernorm(x, gamma, beta, eps=1e-5):
    mean = jnp.mean(x, axis=-1, keepdims=True)
    var = jnp.mean((x - mean) ** 2, axis=-1, keepdims=True)
    inv = jax.lax.rsqrt(var + eps)
    return (x - mean) * inv * gamma + beta


# ---------------------------------------------------------------------------
# Kernels
# ---------------------------------------------------------------------------
def _linear_kernel(x_ref, w_ref, b_ref, out_ref):
    # (rows, Din) @ (Din, Dout) + (1, Dout)
    y = jnp.dot(x_ref[...], w_ref[...], preferred_element_type=jnp.float32) + b_ref[...]
    out_ref[...] = y.astype(out_ref.dtype)


def _embed_kernel(x_ref, w_ref, b_ref, pos_ref, out_ref):
    tok = jnp.dot(x_ref[...], w_ref[...], preferred_element_type=jnp.float32)
    out_ref[...] = (tok + b_ref[...] + pos_ref[...]).astype(out_ref.dtype)


def _attention_kernel(q_ref, k_ref, v_ref, out_ref, wts_ref, *, scale):
    # q/k/v: (G, S, P) with G = batch*heads tile -> batched dots on the leading dim.
    q = q_ref[...]
    k = k_ref[...]
    v = v_ref[...]
    s = jnp.einsum("nqp,nkp->nqk", q, k, preferred_element_type=jnp.float32) * scale
    m = jnp.max(s, axis=-1, keepdims=True)
    e = jnp.exp(s - m)
    denom = jnp.sum(e, axis=-1, keepdims=True)
    w = e * pl.reciprocal(denom, approx=False)       # exact: keeps wts check tight
    wts_ref[...] = w.astype(wts_ref.dtype)           # single slab store per grid step
    # TODO(synk): dropout(p=0.1) on w for training mode (pltpu.prng_*); identity in eval.
    out = jnp.einsum("nqk,nkp->nqp", w, v, preferred_element_type=jnp.float32)
    out_ref[...] = out.astype(out_ref.dtype)


def _combine_ffn_kernel(x_ref, attn_ref, wc_ref, bc_ref,
                        ln1g_ref, ln1b_ref, w1_ref, bf1_ref, w2_ref, bf2_ref,
                        ln2g_ref, ln2b_ref, out_ref):
    x = x_ref[...]
    a = jnp.dot(attn_ref[...], wc_ref[...], preferred_element_type=jnp.float32) + bc_ref[...]
    h1 = _layernorm(x + a, ln1g_ref[...], ln1b_ref[...])
    f = jnp.dot(h1, w1_ref[...], preferred_element_type=jnp.float32) + bf1_ref[...]
    f = jnp.maximum(f, 0.0)
    f = jnp.dot(f, w2_ref[...], preferred_element_type=jnp.float32) + bf2_ref[...]
    out_ref[...] = _layernorm(h1 + f, ln2g_ref[...], ln2b_ref[...]).astype(out_ref.dtype)


# ---------------------------------------------------------------------------
# pallas_call wrappers
# ---------------------------------------------------------------------------
def _pick_tile(n, cap=256):
    """Largest tile <= cap that evenly divides n (n itself if already small)."""
    if n <= cap:
        return n
    t = cap - (cap % 8)
    while n % t:
        t -= 8
    return t


def _row_tiled_linear(x2d, w, b):
    rows, din = x2d.shape
    dout = w.shape[1]
    rt = _pick_tile(rows)
    grid = (rows // rt,)
    return pl.pallas_call(
        _linear_kernel,
        out_shape=jax.ShapeDtypeStruct((rows, dout), x2d.dtype),
        grid_spec=pltpu.PrefetchScalarGridSpec(
            num_scalar_prefetch=0,
            grid=grid,
            in_specs=[
                pl.BlockSpec((rt, din), lambda i: (i, 0)),
                pl.BlockSpec((din, dout), lambda i: (0, 0)),
                pl.BlockSpec((1, dout), lambda i: (0, 0)),
            ],
            out_specs=pl.BlockSpec((rt, dout), lambda i: (i, 0)),
        ),
        compiler_params=pltpu.CompilerParams(dimension_semantics=("parallel",)),
        cost_estimate=pl.CostEstimate(
            flops=2 * rows * din * dout,
            transcendentals=0,
            bytes_accessed=4 * (rows * din + din * dout + dout + rows * dout),
        ),
    )(x2d, w, b)


def token_position_embedding(x, params):
    B, S, V = x.shape
    E = params["tok_w"].shape[0]
    x2d = x.reshape(B * S, V)
    pos2d = jnp.tile(params["pos"][:S], (B, 1))          # row r -> position r % S
    wt = params["tok_w"].T                               # (V, E)
    bt = params["tok_b"].reshape(1, E)
    rows = B * S
    rt = _pick_tile(rows)
    out = pl.pallas_call(
        _embed_kernel,
        out_shape=jax.ShapeDtypeStruct((rows, E), x.dtype),
        grid_spec=pltpu.PrefetchScalarGridSpec(
            num_scalar_prefetch=0,
            grid=(rows // rt,),
            in_specs=[
                pl.BlockSpec((rt, V), lambda i: (i, 0)),
                pl.BlockSpec((V, E), lambda i: (0, 0)),
                pl.BlockSpec((1, E), lambda i: (0, 0)),
                pl.BlockSpec((rt, E), lambda i: (i, 0)),
            ],
            out_specs=pl.BlockSpec((rt, E), lambda i: (i, 0)),
        ),
        compiler_params=pltpu.CompilerParams(dimension_semantics=("parallel",)),
        cost_estimate=pl.CostEstimate(
            flops=2 * rows * V * E + 2 * rows * E,
            transcendentals=0,
            bytes_accessed=4 * (rows * V + V * E + 2 * rows * E),
        ),
    )(x2d, wt, bt, pos2d)
    return out.reshape(B, S, E)


def _attention(qh, kh, vh, scale):
    N, S, P = qh.shape                                   # N = B * num_heads
    g = _pick_tile(N, cap=64)
    kernel = functools.partial(_attention_kernel, scale=scale)
    out, wts = pl.pallas_call(
        kernel,
        out_shape=(
            jax.ShapeDtypeStruct((N, S, P), qh.dtype),
            jax.ShapeDtypeStruct((N, S, S), jnp.float32),
        ),
        grid_spec=pltpu.PrefetchScalarGridSpec(
            num_scalar_prefetch=0,
            grid=(N // g,),
            in_specs=[pl.BlockSpec((g, S, P), lambda i: (i, 0, 0))] * 3,
            out_specs=[
                pl.BlockSpec((g, S, P), lambda i: (i, 0, 0)),
                pl.BlockSpec((g, S, S), lambda i: (i, 0, 0)),
            ],
        ),
        compiler_params=pltpu.CompilerParams(dimension_semantics=("parallel",)),
        cost_estimate=pl.CostEstimate(
            flops=4 * N * S * S * P,
            transcendentals=N * S * S,
            bytes_accessed=4 * (4 * N * S * P + N * S * S),
        ),
    )(qh, kh, vh)
    return out, wts


def _combine_ffn(x2d, attn2d, kp):
    rows, E = x2d.shape
    F = kp["w1"].shape[1]
    rt = _pick_tile(rows)
    row_spec = pl.BlockSpec((rt, E), lambda i: (i, 0))

    def full(shape):
        return pl.BlockSpec(shape, lambda i: (0, 0))

    return pl.pallas_call(
        _combine_ffn_kernel,
        out_shape=jax.ShapeDtypeStruct((rows, E), x2d.dtype),
        grid_spec=pltpu.PrefetchScalarGridSpec(
            num_scalar_prefetch=0,
            grid=(rows // rt,),
            in_specs=[
                row_spec, row_spec,                      # residual x, attention output
                full((E, E)), full((1, E)),              # combine_heads
                full((1, E)), full((1, E)),              # layernorm1 gamma/beta
                full((E, F)), full((1, F)),              # ffn linear1
                full((F, E)), full((1, E)),              # ffn linear2
                full((1, E)), full((1, E)),              # layernorm2 gamma/beta
            ],
            out_specs=row_spec,
        ),
        compiler_params=pltpu.CompilerParams(dimension_semantics=("parallel",)),
        cost_estimate=pl.CostEstimate(
            flops=2 * rows * E * E + 4 * rows * E * F + 12 * rows * E,
            transcendentals=2 * rows,
            bytes_accessed=4 * (3 * rows * E + E * E + 2 * E * F + 6 * E + F),
        ),
    )(x2d, attn2d, kp["wc"], kp["bc"], kp["ln1_g"], kp["ln1_b"],
      kp["w1"], kp["bf1"], kp["w2"], kp["bf2"], kp["ln2_g"], kp["ln2_b"])


# ---------------------------------------------------------------------------
# Model assembly (glue is pure XLA: reshapes / transposes / weight prep only)
# ---------------------------------------------------------------------------
def _kernel_block_params(blk):
    """Torch-convention block params -> kernel-ready layouts (pre-transposed, QKV fused)."""
    E = blk["wq"].shape[0]
    return {
        "wqkv": jnp.concatenate([blk["wq"].T, blk["wk"].T, blk["wv"].T], axis=1),  # (E, 3E)
        "bqkv": jnp.concatenate([blk["bq"], blk["bk"], blk["bv"]]).reshape(1, 3 * E),
        "wc": blk["wc"].T, "bc": blk["bc"].reshape(1, E),
        "w1": blk["w1"].T, "bf1": blk["b1"].reshape(1, -1),
        "w2": blk["w2"].T, "bf2": blk["b2"].reshape(1, E),
        "ln1_g": blk["ln1_g"].reshape(1, E), "ln1_b": blk["ln1_b"].reshape(1, E),
        "ln2_g": blk["ln2_g"].reshape(1, E), "ln2_b": blk["ln2_b"].reshape(1, E),
    }


def transformer_block_forward(x, blk, num_heads):
    B, S, E = x.shape
    H = num_heads
    P = E // H
    kp = _kernel_block_params(blk)
    x2d = x.reshape(B * S, E)

    # Fused QKV projection: one (B*S, E) x (E, 3E) matmul.
    qkv = _row_tiled_linear(x2d, kp["wqkv"], kp["bqkv"])            # (B*S, 3E)

    # Head split (wrapper-level layout glue; matches torch separate_heads).
    def to_heads(t):                                                # (B*S, E) -> (B*H, S, P)
        return t.reshape(B, S, H, P).transpose(0, 2, 1, 3).reshape(B * H, S, P)

    qh, kh, vh = (to_heads(qkv[:, :E]), to_heads(qkv[:, E:2 * E]), to_heads(qkv[:, 2 * E:]))

    attn_h, wts = _attention(qh, kh, vh, scale=1.0 / math.sqrt(P))
    attn2d = attn_h.reshape(B, H, S, P).transpose(0, 2, 1, 3).reshape(B * S, E)
    wts = wts.reshape(B, H, S, S)

    out2d = _combine_ffn(x2d, attn2d, kp)
    return out2d.reshape(B, S, E), wts


def transformer_classifier_forward(x, params, num_heads):
    B, S, _ = x.shape
    h = token_position_embedding(x, params)
    attention_weights = []
    for blk in params["blocks"]:
        h, w = transformer_block_forward(h, blk, num_heads)
        attention_weights.append(w)
    xflat = h.reshape(B, -1)                                        # nn.Flatten
    logits = _row_tiled_linear(xflat, params["fc_w"].T, params["fc_b"].reshape(1, -1))
    return logits, attention_weights


# ---------------------------------------------------------------------------
# Deterministic parameter init (torch Linear convention: weight (out,in), bias (out,))
# ---------------------------------------------------------------------------
def init_model_params(key, maxlen, vocab_size, embed_dim, num_heads, ff_dim,
                      num_classes, num_layers):
    keys = iter(jax.random.split(key, 64))

    def lin(kin, kout):
        s = 1.0 / math.sqrt(kin)
        return (jax.random.uniform(next(keys), (kout, kin), jnp.float32, -s, s),
                jax.random.uniform(next(keys), (kout,), jnp.float32, -s, s))

    params = {}
    params["tok_w"], params["tok_b"] = lin(vocab_size, embed_dim)
    params["pos"] = jax.random.normal(next(keys), (maxlen, embed_dim), jnp.float32)
    blocks = []
    for _ in range(num_layers):
        blk = {}
        blk["wq"], blk["bq"] = lin(embed_dim, embed_dim)
        blk["wk"], blk["bk"] = lin(embed_dim, embed_dim)
        blk["wv"], blk["bv"] = lin(embed_dim, embed_dim)
        blk["wc"], blk["bc"] = lin(embed_dim, embed_dim)
        blk["w1"], blk["b1"] = lin(embed_dim, ff_dim)
        blk["w2"], blk["b2"] = lin(ff_dim, embed_dim)
        blk["ln1_g"] = jax.random.uniform(next(keys), (embed_dim,), jnp.float32, 0.5, 1.5)
        blk["ln1_b"] = jax.random.uniform(next(keys), (embed_dim,), jnp.float32, -0.5, 0.5)
        blk["ln2_g"] = jax.random.uniform(next(keys), (embed_dim,), jnp.float32, 0.5, 1.5)
        blk["ln2_b"] = jax.random.uniform(next(keys), (embed_dim,), jnp.float32, -0.5, 0.5)
        blocks.append(blk)
    params["blocks"] = blocks
    params["fc_w"], params["fc_b"] = lin(maxlen * embed_dim, num_classes)
    return params


# ---------------------------------------------------------------------------
# Pure-JAX reference mirroring the torch forward (eval mode)
# ---------------------------------------------------------------------------
def _ln_ref(x, g, b, eps=1e-5):
    m = jnp.mean(x, axis=-1, keepdims=True)
    v = jnp.mean((x - m) ** 2, axis=-1, keepdims=True)
    return (x - m) / jnp.sqrt(v + eps) * g + b


def reference_forward(x, params, num_heads):
    B, S, _ = x.shape
    E = params["tok_w"].shape[0]
    P = E // num_heads
    h = x @ params["tok_w"].T + params["tok_b"] + params["pos"][:S][None]
    ws_all = []
    for blk in params["blocks"]:
        q = h @ blk["wq"].T + blk["bq"]
        k = h @ blk["wk"].T + blk["bk"]
        v = h @ blk["wv"].T + blk["bv"]

        def split(t):
            return t.reshape(B, S, num_heads, P).transpose(0, 2, 1, 3)

        q, k, v = split(q), split(k), split(v)
        scores = jnp.einsum("bhqd,bhkd->bhqk", q, k) / math.sqrt(P)
        w = jax.nn.softmax(scores, axis=-1)
        attn = jnp.einsum("bhqk,bhkd->bhqd", w, v)
        attn = attn.transpose(0, 2, 1, 3).reshape(B, S, E)
        attn = attn @ blk["wc"].T + blk["bc"]
        h1 = _ln_ref(h + attn, blk["ln1_g"], blk["ln1_b"])
        f = jnp.maximum(h1 @ blk["w1"].T + blk["b1"], 0.0)
        f = f @ blk["w2"].T + blk["b2"]
        h = _ln_ref(h1 + f, blk["ln2_g"], blk["ln2_b"])
        ws_all.append(w)
    logits = h.reshape(B, S * E) @ params["fc_w"].T + params["fc_b"]
    return logits, ws_all


# ---------------------------------------------------------------------------
if __name__ == "__main__":
    maxlen, vocab_size, embed_dim = 8, 16, 32
    num_heads, ff_dim, num_classes, num_layers = 4, 64, 4, 3
    B = 2

    key = jax.random.PRNGKey(0)
    kx, kp = jax.random.split(key)
    x = jax.random.normal(kx, (B, maxlen, vocab_size), jnp.float32)
    params = init_model_params(kp, maxlen, vocab_size, embed_dim, num_heads,
                               ff_dim, num_classes, num_layers)

    fwd = jax.jit(functools.partial(transformer_classifier_forward, num_heads=num_heads))
    logits, attn_ws = fwd(x, params)
    jax.block_until_ready((logits, attn_ws))

    ref_logits, ref_ws = reference_forward(x, params, num_heads)
    assert logits.shape == (B, num_classes)
    assert jnp.allclose(logits, ref_logits, atol=2e-4, rtol=2e-4), "logits mismatch"
    for w, rw in zip(attn_ws, ref_ws):
        assert w.shape == (B, num_heads, maxlen, maxlen)
        assert jnp.allclose(w, rw, atol=1e-4, rtol=1e-4), "attention weights mismatch"

    print("KERNEL_OK")
</pallas_src>

<mosaic_0001>
module attributes {stable_mosaic.version = 11 : i64} {
  func.func @_embed_kernel(%arg0: i32, %arg1: memref<16x16xf32, #tpu.memory_space<vmem>>, %arg2: memref<16x32xf32, #tpu.memory_space<vmem>>, %arg3: memref<1x32xf32, #tpu.memory_space<vmem>>, %arg4: memref<16x32xf32, #tpu.memory_space<vmem>>, %arg5: memref<16x32xf32, #tpu.memory_space<vmem>>) attributes {dimension_semantics = [#tpu.dimension_semantics<parallel>], iteration_bounds = array<i64: 1>, scalar_prefetch = 0 : i64, scratch_operands = 0 : i64, tpu.core_type = #tpu.core_type<tc>, window_params = [{transform_indices = @transform_0, window_bounds = array<i64: 16, 16>}, {pipeline_mode = #tpu.pipeline_mode<synchronous>, transform_indices = @transform_1, window_bounds = array<i64: 16, 32>}, {pipeline_mode = #tpu.pipeline_mode<synchronous>, transform_indices = @transform_2, window_bounds = array<i64: 1, 32>}, {transform_indices = @transform_3, window_bounds = array<i64: 16, 32>}, {transform_indices = @transform_4, window_bounds = array<i64: 16, 32>}]} {
    %c0 = arith.constant 0 : index
    %c0_0 = arith.constant 0 : index
    %0 = vector.load %arg1[%c0, %c0_0] : memref<16x16xf32, #tpu.memory_space<vmem>>, vector<16x16xf32>
    %c0_1 = arith.constant 0 : index
    %c0_2 = arith.constant 0 : index
    %1 = vector.load %arg2[%c0_1, %c0_2] : memref<16x32xf32, #tpu.memory_space<vmem>>, vector<16x32xf32>
    %cst = arith.constant dense<0.000000e+00> : vector<16x32xf32>
    %2 = tpu.matmul %0, %1, %cst {dimension_numbers = #tpu.dot_dimension_numbers<[1], [0], [0], [1], [0, 0, 1, 1], [], []>} : vector<16x16xf32>, vector<16x32xf32>, vector<16x32xf32> -> vector<16x32xf32>
    %c0_3 = arith.constant 0 : index
    %c0_4 = arith.constant 0 : index
    %3 = vector.load %arg3[%c0_3, %c0_4] : memref<1x32xf32, #tpu.memory_space<vmem>>, vector<1x32xf32>
    %4 = vector.broadcast %3 : vector<1x32xf32> to vector<16x32xf32>
    %5 = arith.addf %2, %4 : vector<16x32xf32>
    %c0_5 = arith.constant 0 : index
    %c0_6 = arith.constant 0 : index
    %6 = vector.load %arg4[%c0_5, %c0_6] : memref<16x32xf32, #tpu.memory_space<vmem>>, vector<16x32xf32>
    %7 = arith.addf %5, %6 : vector<16x32xf32>
    %c0_7 = arith.constant 0 : index
    %c0_8 = arith.constant 0 : index
    %8 = vector.load %arg5[%c0_7, %c0_8] : memref<16x32xf32, #tpu.memory_space<vmem>>, vector<16x32xf32>
    tpu.vector_store %arg5[%c0_7, %c0_8], %7 {strides = array<i32>} : memref<16x32xf32, #tpu.memory_space<vmem>>, vector<16x32xf32>,
    return
  }
  func.func @transform_0(%arg0: i32) -> (i32, i32) {
    %c0_i32 = arith.constant 0 : i32
    %c0_i32_0 = arith.constant 0 : i32
    return %arg0, %c0_i32 : i32, i32
  }
  func.func @transform_1(%arg0: i32) -> (i32, i32) {
    %c0_i32 = arith.constant 0 : i32
    %c0_i32_0 = arith.constant 0 : i32
    %c0_i32_1 = arith.constant 0 : i32
    return %c0_i32, %c0_i32_0 : i32, i32
  }
  func.func @transform_2(%arg0: i32) -> (i32, i32) {
    %c0_i32 = arith.constant 0 : i32
    %c0_i32_0 = arith.constant 0 : i32
    %c0_i32_1 = arith.constant 0 : i32
    return %c0_i32, %c0_i32_0 : i32, i32
  }
  func.func @transform_3(%arg0: i32) -> (i32, i32) {
    %c0_i32 = arith.constant 0 : i32
    %c0_i32_0 = arith.constant 0 : i32
    return %arg0, %c0_i32 : i32, i32
  }
  func.func @transform_4(%arg0: i32) -> (i32, i32) {
    %c0_i32 = arith.constant 0 : i32
    %c0_i32_0 = arith.constant 0 : i32
    return %arg0, %c0_i32 : i32, i32
  }
}

module attributes {stable_mosaic.version = 11 : i64} {
  func.func @_linear_kernel(%arg0: i32, %arg1: memref<16x32xf32, #tpu.memory_space<vmem>>, %arg2: memref<32x96xf32, #tpu.memory_space<vmem>>, %arg3: memref<1x96xf32, #tpu.memory_space<vmem>>, %arg4: memref<16x96xf32, #tpu.memory_space<vmem>>) attributes {dimension_semantics = [#tpu.dimension_semantics<parallel>], iteration_bounds = array<i64: 1>, scalar_prefetch = 0 : i64, scratch_operands = 0 : i64, tpu.core_type = #tpu.core_type<tc>, window_params = [{transform_indices = @transform_0, window_bounds = array<i64: 16, 32>}, {pipeline_mode = #tpu.pipeline_mode<synchronous>, transform_indices = @transform_1, window_bounds = array<i64: 32, 96>}, {pipeline_mode = #tpu.pipeline_mode<synchronous>, transform_indices = @transform_2, window_bounds = array<i64: 1, 96>}, {transform_indices = @transform_3, window_bounds = array<i64: 16, 96>}]} {
    %c0 = arith.constant 0 : index
    %c0_0 = arith.constant 0 : index
    %0 = vector.load %arg1[%c0, %c0_0] : memref<16x32xf32, #tpu.memory_space<vmem>>, vector<16x32xf32>
    %c0_1 = arith.constant 0 : index
    %c0_2 = arith.constant 0 : index
    %1 = vector.load %arg2[%c0_1, %c0_2] : memref<32x96xf32, #tpu.memory_space<vmem>>, vector<32x96xf32>
    %cst = arith.constant dense<0.000000e+00> : vector<16x96xf32>
    %2 = tpu.matmul %0, %1, %cst {dimension_numbers = #tpu.dot_dimension_numbers<[1], [0], [0], [1], [0, 0, 1, 1], [], []>} : vector<16x32xf32>, vector<32x96xf32>, vector<16x96xf32> -> vector<16x96xf32>
    %c0_3 = arith.constant 0 : index
    %c0_4 = arith.constant 0 : index
    %3 = vector.load %arg3[%c0_3, %c0_4] : memref<1x96xf32, #tpu.memory_space<vmem>>, vector<1x96xf32>
    %4 = vector.broadcast %3 : vector<1x96xf32> to vector<16x96xf32>
    %5 = arith.addf %2, %4 : vector<16x96xf32>
    %c0_5 = arith.constant 0 : index
    %c0_6 = arith.constant 0 : index
    %6 = vector.load %arg4[%c0_5, %c0_6] : memref<16x96xf32, #tpu.memory_space<vmem>>, vector<16x96xf32>
    tpu.vector_store %arg4[%c0_5, %c0_6], %5 {strides = array<i32>} : memref<16x96xf32, #tpu.memory_space<vmem>>, vector<16x96xf32>,
    return
  }
  func.func @transform_0(%arg0: i32) -> (i32, i32) {
    %c0_i32 = arith.constant 0 : i32
    %c0_i32_0 = arith.constant 0 : i32
    return %arg0, %c0_i32 : i32, i32
  }
  func.func @transform_1(%arg0: i32) -> (i32, i32) {
    %c0_i32 = arith.constant 0 : i32
    %c0_i32_0 = arith.constant 0 : i32
    %c0_i32_1 = arith.constant 0 : i32
    return %c0_i32, %c0_i32_0 : i32, i32
  }
  func.func @transform_2(%arg0: i32) -> (i32, i32) {
    %c0_i32 = arith.constant 0 : i32
    %c0_i32_0 = arith.constant 0 : i32
    %c0_i32_1 = arith.constant 0 : i32
    return %c0_i32, %c0_i32_0 : i32, i32
  }
  func.func @transform_3(%arg0: i32) -> (i32, i32) {
    %c0_i32 = arith.constant 0 : i32
    %c0_i32_0 = arith.constant 0 : i32
    return %arg0, %c0_i32 : i32, i32
  }
}

module attributes {stable_mosaic.version = 11 : i64} {
  func.func @_attention_kernel(%arg0: i32, %arg1: memref<8x8x8xf32, #tpu.memory_space<vmem>>, %arg2: memref<8x8x8xf32, #tpu.memory_space<vmem>>, %arg3: memref<8x8x8xf32, #tpu.memory_space<vmem>>, %arg4: memref<8x8x8xf32, #tpu.memory_space<vmem>>, %arg5: memref<8x8x8xf32, #tpu.memory_space<vmem>>) attributes {dimension_semantics = [#tpu.dimension_semantics<parallel>], iteration_bounds = array<i64: 1>, scalar_prefetch = 0 : i64, scratch_operands = 0 : i64, tpu.core_type = #tpu.core_type<tc>, window_params = [{transform_indices = @transform_0, window_bounds = array<i64: 8, 8, 8>}, {transform_indices = @transform_1, window_bounds = array<i64: 8, 8, 8>}, {transform_indices = @transform_2, window_bounds = array<i64: 8, 8, 8>}, {transform_indices = @transform_3, window_bounds = array<i64: 8, 8, 8>}, {transform_indices = @transform_4, window_bounds = array<i64: 8, 8, 8>}]} {
    %c0 = arith.constant 0 : index
    %c0_0 = arith.constant 0 : index
    %c0_1 = arith.constant 0 : index
    %0 = vector.load %arg1[%c0, %c0_0, %c0_1] : memref<8x8x8xf32, #tpu.memory_space<vmem>>, vector<8x8x8xf32>
    %c0_2 = arith.constant 0 : index
    %c0_3 = arith.constant 0 : index
    %c0_4 = arith.constant 0 : index
    %1 = vector.load %arg2[%c0_2, %c0_3, %c0_4] : memref<8x8x8xf32, #tpu.memory_space<vmem>>, vector<8x8x8xf32>
    %c0_5 = arith.constant 0 : index
    %c0_6 = arith.constant 0 : index
    %c0_7 = arith.constant 0 : index
    %2 = vector.load %arg3[%c0_5, %c0_6, %c0_7] : memref<8x8x8xf32, #tpu.memory_space<vmem>>, vector<8x8x8xf32>
    "tpu.trace_start"() <{level = 10 : i32, message = "nqp,nkp->nqk"}> : () -> ()
    %cst = arith.constant dense<0.000000e+00> : vector<8x8x8xf32>
    %3 = tpu.matmul %0, %1, %cst {dimension_numbers = #tpu.dot_dimension_numbers<[2], [2], [1], [1], [0, 0, 0, 1, 1, 1], [0], [0]>} : vector<8x8x8xf32>, vector<8x8x8xf32>, vector<8x8x8xf32> -> vector<8x8x8xf32>
    "tpu.trace_stop"() : () -> ()
    %cst_8 = arith.constant 0.353553385 : f32
    %4 = vector.broadcast %cst_8 : f32 to vector<8x8x8xf32>
    %5 = arith.mulf %3, %4 : vector<8x8x8xf32>
    %cst_9 = arith.constant dense<0xFF800000> : vector<8x8xf32>
    %6 = vector.multi_reduction <maximumf>, %5, %cst_9 [2] : vector<8x8x8xf32> to vector<8x8xf32>
    %7 = vector.shape_cast %6 : vector<8x8xf32> to vector<8x8x1xf32>
    %8 = vector.broadcast %7 : vector<8x8x1xf32> to vector<8x8x8xf32>
    %9 = arith.subf %5, %8 : vector<8x8x8xf32>
    %10 = math.exp %9 : vector<8x8x8xf32>
    %cst_10 = arith.constant dense<0.000000e+00> : vector<8x8xf32>
    %11 = vector.multi_reduction <add>, %10, %cst_10 [2] : vector<8x8x8xf32> to vector<8x8xf32>
    %12 = vector.shape_cast %11 : vector<8x8xf32> to vector<8x8x1xf32>
    %13 = tpu.reciprocal %12 : vector<8x8x1xf32> -> vector<8x8x1xf32>
    %14 = vector.broadcast %13 : vector<8x8x1xf32> to vector<8x8x8xf32>
    %15 = arith.mulf %10, %14 : vector<8x8x8xf32>
    %c0_11 = arith.constant 0 : index
    %c0_12 = arith.constant 0 : index
    %c0_13 = arith.constant 0 : index
    %16 = vector.load %arg5[%c0_11, %c0_12, %c0_13] : memref<8x8x8xf32, #tpu.memory_space<vmem>>, vector<8x8x8xf32>
    tpu.vector_store %arg5[%c0_11, %c0_12, %c0_13], %15 {strides = array<i32>} : memref<8x8x8xf32, #tpu.memory_space<vmem>>, vector<8x8x8xf32>,
    "tpu.trace_start"() <{level = 10 : i32, message = "nqk,nkp->nqp"}> : () -> ()
    %cst_14 = arith.constant dense<0.000000e+00> : vector<8x8x8xf32>
    %17 = tpu.matmul %15, %2, %cst_14 {dimension_numbers = #tpu.dot_dimension_numbers<[2], [1], [1], [2], [0, 0, 0, 1, 1, 2], [0], [0]>} : vector<8x8x8xf32>, vector<8x8x8xf32>, vector<8x8x8xf32> -> vector<8x8x8xf32>
    "tpu.trace_stop"() : () -> ()
    %c0_15 = arith.constant 0 : index
    %c0_16 = arith.constant 0 : index
    %c0_17 = arith.constant 0 : index
    %18 = vector.load %arg4[%c0_15, %c0_16, %c0_17] : memref<8x8x8xf32, #tpu.memory_space<vmem>>, vector<8x8x8xf32>
    tpu.vector_store %arg4[%c0_15, %c0_16, %c0_17], %17 {strides = array<i32>} : memref<8x8x8xf32, #tpu.memory_space<vmem>>, vector<8x8x8xf32>,
    return
  }
  func.func @transform_0(%arg0: i32) -> (i32, i32, i32) {
    %c0_i32 = arith.constant 0 : i32
    %c0_i32_0 = arith.constant 0 : i32
    %c0_i32_1 = arith.constant 0 : i32
    return %arg0, %c0_i32, %c0_i32_0 : i32, i32, i32
  }
  func.func @transform_1(%arg0: i32) -> (i32, i32, i32) {
    %c0_i32 = arith.constant 0 : i32
    %c0_i32_0 = arith.constant 0 : i32
    %c0_i32_1 = arith.constant 0 : i32
    return %arg0, %c0_i32, %c0_i32_0 : i32, i32, i32
  }
  func.func @transform_2(%arg0: i32) -> (i32, i32, i32) {
    %c0_i32 = arith.constant 0 : i32
    %c0_i32_0 = arith.constant 0 : i32
    %c0_i32_1 = arith.constant 0 : i32
    return %arg0, %c0_i32, %c0_i32_0 : i32, i32, i32
  }
  func.func @transform_3(%arg0: i32) -> (i32, i32, i32) {
    %c0_i32 = arith.constant 0 : i32
    %c0_i32_0 = arith.constant 0 : i32
    %c0_i32_1 = arith.constant 0 : i32
    return %arg0, %c0_i32, %c0_i32_0 : i32, i32, i32
  }
  func.func @transform_4(%arg0: i32) -> (i32, i32, i32) {
    %c0_i32 = arith.constant 0 : i32
    %c0_i32_0 = arith.constant 0 : i32
    %c0_i32_1 = arith.constant 0 : i32
    return %arg0, %c0_i32, %c0_i32_0 : i32, i32, i32
  }
}

module attributes {stable_mosaic.version = 11 : i64} {
  func.func @_combine_ffn_kernel(%arg0: i32, %arg1: memref<16x32xf32, #tpu.memory_space<vmem>>, %arg2: memref<16x32xf32, #tpu.memory_space<vmem>>, %arg3: memref<32x32xf32, #tpu.memory_space<vmem>>, %arg4: memref<1x32xf32, #tpu.memory_space<vmem>>, %arg5: memref<1x32xf32, #tpu.memory_space<vmem>>, %arg6: memref<1x32xf32, #tpu.memory_space<vmem>>, %arg7: memref<32x64xf32, #tpu.memory_space<vmem>>, %arg8: memref<1x64xf32, #tpu.memory_space<vmem>>, %arg9: memref<64x32xf32, #tpu.memory_space<vmem>>, %arg10: memref<1x32xf32, #tpu.memory_space<vmem>>, %arg11: memref<1x32xf32, #tpu.memory_space<vmem>>, %arg12: memref<1x32xf32, #tpu.memory_space<vmem>>, %arg13: memref<16x32xf32, #tpu.memory_space<vmem>>) attributes {dimension_semantics = [#tpu.dimension_semantics<parallel>], iteration_bounds = array<i64: 1>, scalar_prefetch = 0 : i64, scratch_operands = 0 : i64, tpu.core_type = #tpu.core_type<tc>, window_params = [{transform_indices = @transform_0, window_bounds = array<i64: 16, 32>}, {transform_indices = @transform_1, window_bounds = array<i64: 16, 32>}, {pipeline_mode = #tpu.pipeline_mode<synchronous>, transform_indices = @transform_2, window_bounds = array<i64: 32, 32>}, {pipeline_mode = #tpu.pipeline_mode<synchronous>, transform_indices = @transform_3, window_bounds = array<i64: 1, 32>}, {pipeline_mode = #tpu.pipeline_mode<synchronous>, transform_indices = @transform_4, window_bounds = array<i64: 1, 32>}, {pipeline_mode = #tpu.pipeline_mode<synchronous>, transform_indices = @transform_5, window_bounds = array<i64: 1, 32>}, {pipeline_mode = #tpu.pipeline_mode<synchronous>, transform_indices = @transform_6, window_bounds = array<i64: 32, 64>}, {pipeline_mode = #tpu.pipeline_mode<synchronous>, transform_indices = @transform_7, window_bounds = array<i64: 1, 64>}, {pipeline_mode = #tpu.pipeline_mode<synchronous>, transform_indices = @transform_8, window_bounds = array<i64: 64, 32>}, {pipeline_mode = #tpu.pipeline_mode<synchronous>, transform_indices = @transform_9, window_bounds = array<i64: 1, 32>}, {pipeline_mode = #tpu.pipeline_mode<synchronous>, transform_indices = @transform_10, window_bounds = array<i64: 1, 32>}, {pipeline_mode = #tpu.pipeline_mode<synchronous>, transform_indices = @transform_11, window_bounds = array<i64: 1, 32>}, {transform_indices = @transform_12, window_bounds = array<i64: 16, 32>}]} {
    %c0 = arith.constant 0 : index
    %c0_0 = arith.constant 0 : index
    %0 = vector.load %arg1[%c0, %c0_0] : memref<16x32xf32, #tpu.memory_space<vmem>>, vector<16x32xf32>
    %c0_1 = arith.constant 0 : index
    %c0_2 = arith.constant 0 : index
    %1 = vector.load %arg2[%c0_1, %c0_2] : memref<16x32xf32, #tpu.memory_space<vmem>>, vector<16x32xf32>
    %c0_3 = arith.constant 0 : index
    %c0_4 = arith.constant 0 : index
    %2 = vector.load %arg3[%c0_3, %c0_4] : memref<32x32xf32, #tpu.memory_space<vmem>>, vector<32x32xf32>
    %cst = arith.constant dense<0.000000e+00> : vector<16x32xf32>
    %3 = tpu.matmul %1, %2, %cst {dimension_numbers = #tpu.dot_dimension_numbers<[1], [0], [0], [1], [0, 0, 1, 1], [], []>} : vector<16x32xf32>, vector<32x32xf32>, vector<16x32xf32> -> vector<16x32xf32>
    %c0_5 = arith.constant 0 : index
    %c0_6 = arith.constant 0 : index
    %4 = vector.load %arg4[%c0_5, %c0_6] : memref<1x32xf32, #tpu.memory_space<vmem>>, vector<1x32xf32>
    %5 = vector.broadcast %4 : vector<1x32xf32> to vector<16x32xf32>
    %6 = arith.addf %3, %5 : vector<16x32xf32>
    %7 = arith.addf %0, %6 : vector<16x32xf32>
    %c0_7 = arith.constant 0 : index
    %c0_8 = arith.constant 0 : index
    %8 = vector.load %arg5[%c0_7, %c0_8] : memref<1x32xf32, #tpu.memory_space<vmem>>, vector<1x32xf32>
    %c0_9 = arith.constant 0 : index
    %c0_10 = arith.constant 0 : index
    %9 = vector.load %arg6[%c0_9, %c0_10] : memref<1x32xf32, #tpu.memory_space<vmem>>, vector<1x32xf32>
    %cst_11 = arith.constant dense<0.000000e+00> : vector<16xf32>
    %10 = vector.multi_reduction <add>, %7, %cst_11 [1] : vector<16x32xf32> to vector<16xf32>
    %11 = vector.shape_cast %10 : vector<16xf32> to vector<16x1xf32>
    %cst_12 = arith.constant 3.200000e+01 : f32
    %12 = vector.broadcast %cst_12 : f32 to vector<16x1xf32>
    %13 = arith.divf %11, %12 : vector<16x1xf32>
    %14 = vector.broadcast %13 : vector<16x1xf32> to vector<16x32xf32>
    %15 = arith.subf %7, %14 : vector<16x32xf32>
    %16 = arith.mulf %15, %15 : vector<16x32xf32>
    %cst_13 = arith.constant dense<0.000000e+00> : vector<16xf32>
    %17 = vector.multi_reduction <add>, %16, %cst_13 [1] : vector<16x32xf32> to vector<16xf32>
    %18 = vector.shape_cast %17 : vector<16xf32> to vector<16x1xf32>
    %cst_14 = arith.constant 3.200000e+01 : f32
    %19 = vector.broadcast %cst_14 : f32 to vector<16x1xf32>
    %20 = arith.divf %18, %19 : vector<16x1xf32>
    %cst_15 = arith.constant 9.99999974E-6 : f32
    %21 = vector.broadcast %cst_15 : f32 to vector<16x1xf32>
    %22 = arith.addf %20, %21 : vector<16x1xf32>
    %23 = math.rsqrt %22 : vector<16x1xf32>
    %24 = vector.broadcast %13 : vector<16x1xf32> to vector<16x32xf32>
    %25 = arith.subf %7, %24 : vector<16x32xf32>
    %26 = vector.broadcast %23 : vector<16x1xf32> to vector<16x32xf32>
    %27 = arith.mulf %25, %26 : vector<16x32xf32>
    %28 = vector.broadcast %8 : vector<1x32xf32> to vector<16x32xf32>
    %29 = arith.mulf %27, %28 : vector<16x32xf32>
    %30 = vector.broadcast %9 : vector<1x32xf32> to vector<16x32xf32>
    %31 = arith.addf %29, %30 : vector<16x32xf32>
    %c0_16 = arith.constant 0 : index
    %c0_17 = arith.constant 0 : index
    %32 = vector.load %arg7[%c0_16, %c0_17] : memref<32x64xf32, #tpu.memory_space<vmem>>, vector<32x64xf32>
    %cst_18 = arith.constant dense<0.000000e+00> : vector<16x64xf32>
    %33 = tpu.matmul %31, %32, %cst_18 {dimension_numbers = #tpu.dot_dimension_numbers<[1], [0], [0], [1], [0, 0, 1, 1], [], []>} : vector<16x32xf32>, vector<32x64xf32>, vector<16x64xf32> -> vector<16x64xf32>
    %c0_19 = arith.constant 0 : index
    %c0_20 = arith.constant 0 : index
    %34 = vector.load %arg8[%c0_19, %c0_20] : memref<1x64xf32, #tpu.memory_space<vmem>>, vector<1x64xf32>
    %35 = vector.broadcast %34 : vector<1x64xf32> to vector<16x64xf32>
    %36 = arith.addf %33, %35 : vector<16x64xf32>
    %cst_21 = arith.constant 0.000000e+00 : f32
    %37 = vector.broadcast %cst_21 : f32 to vector<16x64xf32>
    %38 = arith.maximumf %36, %37 : vector<16x64xf32>
    %c0_22 = arith.constant 0 : index
    %c0_23 = arith.constant 0 : index
    %39 = vector.load %arg9[%c0_22, %c0_23] : memref<64x32xf32, #tpu.memory_space<vmem>>, vector<64x32xf32>
    %cst_24 = arith.constant dense<0.000000e+00> : vector<16x32xf32>
    %40 = tpu.matmul %38, %39, %cst_24 {dimension_numbers = #tpu.dot_dimension_numbers<[1], [0], [0], [1], [0, 0, 1, 1], [], []>} : vector<16x64xf32>, vector<64x32xf32>, vector<16x32xf32> -> vector<16x32xf32>
    %c0_25 = arith.constant 0 : index
    %c0_26 = arith.constant 0 : index
    %41 = vector.load %arg10[%c0_25, %c0_26] : memref<1x32xf32, #tpu.memory_space<vmem>>, vector<1x32xf32>
    %42 = vector.broadcast %41 : vector<1x32xf32> to vector<16x32xf32>
    %43 = arith.addf %40, %42 : vector<16x32xf32>
    %44 = arith.addf %31, %43 : vector<16x32xf32>
    %c0_27 = arith.constant 0 : index
    %c0_28 = arith.constant 0 : index
    %45 = vector.load %arg11[%c0_27, %c0_28] : memref<1x32xf32, #tpu.memory_space<vmem>>, vector<1x32xf32>
    %c0_29 = arith.constant 0 : index
    %c0_30 = arith.constant 0 : index
    %46 = vector.load %arg12[%c0_29, %c0_30] : memref<1x32xf32, #tpu.memory_space<vmem>>, vector<1x32xf32>
    %cst_31 = arith.constant dense<0.000000e+00> : vector<16xf32>
    %47 = vector.multi_reduction <add>, %44, %cst_31 [1] : vector<16x32xf32> to vector<16xf32>
    %48 = vector.shape_cast %47 : vector<16xf32> to vector<16x1xf32>
    %cst_32 = arith.constant 3.200000e+01 : f32
    %49 = vector.broadcast %cst_32 : f32 to vector<16x1xf32>
    %50 = arith.divf %48, %49 : vector<16x1xf32>
    %51 = vector.broadcast %50 : vector<16x1xf32> to vector<16x32xf32>
    %52 = arith.subf %44, %51 : vector<16x32xf32>
    %53 = arith.mulf %52, %52 : vector<16x32xf32>
    %cst_33 = arith.constant dense<0.000000e+00> : vector<16xf32>
    %54 = vector.multi_reduction <add>, %53, %cst_33 [1] : vector<16x32xf32> to vector<16xf32>
    %55 = vector.shape_cast %54 : vector<16xf32> to vector<16x1xf32>
    %cst_34 = arith.constant 3.200000e+01 : f32
    %56 = vector.broadcast %cst_34 : f32 to vector<16x1xf32>
    %57 = arith.divf %55, %56 : vector<16x1xf32>
    %cst_35 = arith.constant 9.99999974E-6 : f32
    %58 = vector.broadcast %cst_35 : f32 to vector<16x1xf32>
    %59 = arith.addf %57, %58 : vector<16x1xf32>
    %60 = math.rsqrt %59 : vector<16x1xf32>
    %61 = vector.broadcast %50 : vector<16x1xf32> to vector<16x32xf32>
    %62 = arith.subf %44, %61 : vector<16x32xf32>
    %63 = vector.broadcast %60 : vector<16x1xf32> to vector<16x32xf32>
    %64 = arith.mulf %62, %63 : vector<16x32xf32>
    %65 = vector.broadcast %45 : vector<1x32xf32> to vector<16x32xf32>
    %66 = arith.mulf %64, %65 : vector<16x32xf32>
    %67 = vector.broadcast %46 : vector<1x32xf32> to vector<16x32xf32>
    %68 = arith.addf %66, %67 : vector<16x32xf32>
    %c0_36 = arith.constant 0 : index
    %c0_37 = arith.constant 0 : index
    %69 = vector.load %arg13[%c0_36, %c0_37] : memref<16x32xf32, #tpu.memory_space<vmem>>, vector<16x32xf32>
    tpu.vector_store %arg13[%c0_36, %c0_37], %68 {strides = array<i32>} : memref<16x32xf32, #tpu.memory_space<vmem>>, vector<16x32xf32>,
    return
  }
  func.func @transform_0(%arg0: i32) -> (i32, i32) {
    %c0_i32 = arith.constant 0 : i32
    %c0_i32_0 = arith.constant 0 : i32
    return %arg0, %c0_i32 : i32, i32
  }
  func.func @transform_1(%arg0: i32) -> (i32, i32) {
    %c0_i32 = arith.constant 0 : i32
    %c0_i32_0 = arith.constant 0 : i32
    return %arg0, %c0_i32 : i32, i32
  }
  func.func @transform_2(%arg0: i32) -> (i32, i32) {
    %c0_i32 = arith.constant 0 : i32
    %c0_i32_0 = arith.constant 0 : i32
    %c0_i32_1 = arith.constant 0 : i32
    return %c0_i32, %c0_i32_0 : i32, i32
  }
  func.func @transform_3(%arg0: i32) -> (i32, i32) {
    %c0_i32 = arith.constant 0 : i32
    %c0_i32_0 = arith.constant 0 : i32
    %c0_i32_1 = arith.constant 0 : i32
    return %c0_i32, %c0_i32_0 : i32, i32
  }
  func.func @transform_4(%arg0: i32) -> (i32, i32) {
    %c0_i32 = arith.constant 0 : i32
    %c0_i32_0 = arith.constant 0 : i32
    %c0_i32_1 = arith.constant 0 : i32
    return %c0_i32, %c0_i32_0 : i32, i32
  }
  func.func @transform_5(%arg0: i32) -> (i32, i32) {
    %c0_i32 = arith.constant 0 : i32
    %c0_i32_0 = arith.constant 0 : i32
    %c0_i32_1 = arith.constant 0 : i32
    return %c0_i32, %c0_i32_0 : i32, i32
  }
  func.func @transform_6(%arg0: i32) -> (i32, i32) {
    %c0_i32 = arith.constant 0 : i32
    %c0_i32_0 = arith.constant 0 : i32
    %c0_i32_1 = arith.constant 0 : i32
    return %c0_i32, %c0_i32_0 : i32, i32
  }
  func.func @transform_7(%arg0: i32) -> (i32, i32) {
    %c0_i32 = arith.constant 0 : i32
    %c0_i32_0 = arith.constant 0 : i32
    %c0_i32_1 = arith.constant 0 : i32
    return %c0_i32, %c0_i32_0 : i32, i32
  }
  func.func @transform_8(%arg0: i32) -> (i32, i32) {
    %c0_i32 = arith.constant 0 : i32
    %c0_i32_0 = arith.constant 0 : i32
    %c0_i32_1 = arith.constant 0 : i32
    return %c0_i32, %c0_i32_0 : i32, i32
  }
  func.func @transform_9(%arg0: i32) -> (i32, i32) {
    %c0_i32 = arith.constant 0 : i32
    %c0_i32_0 = arith.constant 0 : i32
    %c0_i32_1 = arith.constant 0 : i32
    return %c0_i32, %c0_i32_0 : i32, i32
  }
  func.func @transform_10(%arg0: i32) -> (i32, i32) {
    %c0_i32 = arith.constant 0 : i32
    %c0_i32_0 = arith.constant 0 : i32
    %c0_i32_1 = arith.constant 0 : i32
    return %c0_i32, %c0_i32_0 : i32, i32
  }
  func.func @transform_11(%arg0: i32) -> (i32, i32) {
    %c0_i32 = arith.constant 0 : i32
    %c0_i32_0 = arith.constant 0 : i32
    %c0_i32_1 = arith.constant 0 : i32
    return %c0_i32, %c0_i32_0 : i32, i32
  }
  func.func @transform_12(%arg0: i32) -> (i32, i32) {
    %c0_i32 = arith.constant 0 : i32
    %c0_i32_0 = arith.constant 0 : i32
    return %arg0, %c0_i32 : i32, i32
  }
}

module attributes {stable_mosaic.version = 11 : i64} {
  func.func @_linear_kernel(%arg0: i32, %arg1: memref<2x256xf32, #tpu.memory_space<vmem>>, %arg2: memref<256x4xf32, #tpu.memory_space<vmem>>, %arg3: memref<1x4xf32, #tpu.memory_space<vmem>>, %arg4: memref<2x4xf32, #tpu.memory_space<vmem>>) attributes {dimension_semantics = [#tpu.dimension_semantics<parallel>], iteration_bounds = array<i64: 1>, scalar_prefetch = 0 : i64, scratch_operands = 0 : i64, tpu.core_type = #tpu.core_type<tc>, window_params = [{transform_indices = @transform_0, window_bounds = array<i64: 2, 256>}, {pipeline_mode = #tpu.pipeline_mode<synchronous>, transform_indices = @transform_1, window_bounds = array<i64: 256, 4>}, {pipeline_mode = #tpu.pipeline_mode<synchronous>, transform_indices = @transform_2, window_bounds = array<i64: 1, 4>}, {transform_indices = @transform_3, window_bounds = array<i64: 2, 4>}]} {
    %c0 = arith.constant 0 : index
    %c0_0 = arith.constant 0 : index
    %0 = vector.load %arg1[%c0, %c0_0] : memref<2x256xf32, #tpu.memory_space<vmem>>, vector<2x256xf32>
    %c0_1 = arith.constant 0 : index
    %c0_2 = arith.constant 0 : index
    %1 = vector.load %arg2[%c0_1, %c0_2] : memref<256x4xf32, #tpu.memory_space<vmem>>, vector<256x4xf32>
    %cst = arith.constant dense<0.000000e+00> : vector<2x4xf32>
    %2 = tpu.matmul %0, %1, %cst {dimension_numbers = #tpu.dot_dimension_numbers<[1], [0], [0], [1], [0, 0, 1, 1], [], []>} : vector<2x256xf32>, vector<256x4xf32>, vector<2x4xf32> -> vector<2x4xf32>
    %c0_3 = arith.constant 0 : index
    %c0_4 = arith.constant 0 : index
    %3 = vector.load %arg3[%c0_3, %c0_4] : memref<1x4xf32, #tpu.memory_space<vmem>>, vector<1x4xf32>
    %4 = vector.broadcast %3 : vector<1x4xf32> to vector<2x4xf32>
    %5 = arith.addf %2, %4 : vector<2x4xf32>
    %c0_5 = arith.constant 0 : index
    %c0_6 = arith.constant 0 : index
    %6 = vector.load %arg4[%c0_5, %c0_6] : memref<2x4xf32, #tpu.memory_space<vmem>>, vector<2x4xf32>
    tpu.vector_store %arg4[%c0_5, %c0_6], %5 {strides = array<i32>} : memref<2x4xf32, #tpu.memory_space<vmem>>, vector<2x4xf32>,
    return
  }
  func.func @transform_0(%arg0: i32) -> (i32, i32) {
    %c0_i32 = arith.constant 0 : i32
    %c0_i32_0 = arith.constant 0 : i32
    return %arg0, %c0_i32 : i32, i32
  }
  func.func @transform_1(%arg0: i32) -> (i32, i32) {
    %c0_i32 = arith.constant 0 : i32
    %c0_i32_0 = arith.constant 0 : i32
    %c0_i32_1 = arith.constant 0 : i32
    return %c0_i32, %c0_i32_0 : i32, i32
  }
  func.func @transform_2(%arg0: i32) -> (i32, i32) {
    %c0_i32 = arith.constant 0 : i32
    %c0_i32_0 = arith.constant 0 : i32
    %c0_i32_1 = arith.constant 0 : i32
    return %c0_i32, %c0_i32_0 : i32, i32
  }
  func.func @transform_3(%arg0: i32) -> (i32, i32) {
    %c0_i32 = arith.constant 0 : i32
    %c0_i32_0 = arith.constant 0 : i32
    return %arg0, %c0_i32 : i32, i32
  }
}

</mosaic_0001>

<bundles_post_ra>
// kernel: transformer_classifier_forward.12
= control target key start
LH: loop header
LB: loop body
LE: loop exit
PB: predicated region body
PF: predicated region fallthrough
CT: control target
= control target key end

     0   :  { %vm27_vm0 = vcmask 261120   ;;  %vm109_vm1 = vcmask 785408   ;;  %s191_s1 = inlined_call_operand.vmem [shape: f32[32,96], index: 1, kind: input, shape index: {}]   ;;  %s192_s0 = inlined_call_operand.vmem [shape: f32[16,32], index: 0, kind: input, shape index: {}]   ;;  %s193_s2 = inlined_call_operand.vmem [shape: f32[1,96], index: 2, kind: input, shape index: {}]   ;;  %s194_s3 = inlined_call_operand.vmem [shape: f32[16,96], index: 3, kind: output, shape index: {}]  }
   0x1   :  { %v16_v0 = vld [vmem:[%s191_s1] sm:$0xff]  ;;  %v17_v1 = vld [vmem:[%s191_s1 + $0x8] sm:$0xff]  ;;  %v18_v2 = vld [vmem:[%s191_s1 + $0x10] sm:$0xff] }
   0x2   :  { %v136_v3 = vpack.c.bf16 %v17_v1, %v16_v0  ;;  %v19_v4 = vld [vmem:[%s191_s1 + $0x18] sm:$0xff]  ;;  %v14_v5 = vld [vmem:[%s192_s0] sm:$0xff]  ;;  %v15_v7 = vld [vmem:[%s192_s0 + $0x8] sm:$0xff] }
   0x3   :  { %v140_v6 = vpack.c.bf16 %v19_v4, %v18_v2  ;;  %133 = vmatprep.mubr.msk.f32.mxu0 %vm27_vm0, %v14_v5  ;;  %v116_v8 = vld [vmem:[%s193_s2] ss:$0 sm:$0xff] }
   0x4   :  { %137 = vmatprep.subr.bf16.mxu0 %v136_v3 }
   0x5   :  { %139 = vmatpush3.bf16.msra.mxu0 %v136_v3 }
   0x6   :  { %141 = vmatprep.subr.bf16.mxu0 %v140_v6 }
   0x9   :  { %143 = vmatpush3.bf16.msra.mxu0 %v140_v6 }
   0xc   :  { %134 = vmatmul.mubr.msk.f32.vlgmr.msra.gmra.mrb[0].mxu0 %vm27_vm0, %v15_v7 }
  0xdf   :  { %v135_v9 = vpop.f32.mrb[0].mxu0 }
  0xe0   :  { %v106_v10 = vadd.f32 %v135_v9, %v116_v8  ;;  %v100_v11 = vpop.f32.mrb[1].mxu0 }
  0xe1   :  { %v101_v12 = vadd.f32 %v116_v8, %v100_v11 }
  0xe2   :  { %111 = vst.msk [vmem:[%s194_s3 + $0x8] sm:$0xff] %vm109_vm1, %v106_v10 }
  0xe3   :  { %110 = vst.msk [vmem:[%s194_s3] sm:$0xff] %vm109_vm1, %v101_v12 }

// kernel: transformer_classifier_forward.11
= control target key start
LH: loop header
LB: loop body
LE: loop exit
PB: predicated region body
PF: predicated region fallthrough
CT: control target
= control target key end

     0   :  { %vm28_vm0 = vcmask 130048   ;;  %vm114_vm1 = vcmask 261120   ;;  %s191_s1 = inlined_call_operand.vmem [shape: f32[16,32], index: 1, kind: input, shape index: {}]   ;;  %s192_s0 = inlined_call_operand.vmem [shape: f32[16,16], index: 0, kind: input, shape index: {}]   ;;  %s193_s2 = inlined_call_operand.vmem [shape: f32[1,32], index: 2, kind: input, shape index: {}]   ;;  %s194_s3 = inlined_call_operand.vmem [shape: f32[16,32], index: 3, kind: input, shape index: {}]   ;;  %s195_s4 = inlined_call_operand.vmem [shape: f32[16,32], index: 4, kind: output, shape index: {}]  }
   0x1   :  { %v19_v0 = vld [vmem:[%s191_s1] sm:$0xff]  ;;  %v20_v1 = vld [vmem:[%s191_s1 + $0x8] sm:$0xff] }
   0x2   :  { %v17_v2 = vld [vmem:[%s192_s0] sm:$0xff]  ;;  %v135_v3 = vpack.c.bf16 %v20_v1, %v19_v0  ;;  %v18_v4 = vld [vmem:[%s192_s0 + $0x8] sm:$0xff] }
   0x3   :  { %132 = vmatprep.mubr.msk.f32.mxu0 %vm28_vm0, %v17_v2  ;;  %v121_v5 = vld [vmem:[%s193_s2] ss:$0 sm:$0xff]  ;;  %v111_v7 = vld [vmem:[%s194_s3 + $0x8] sm:$0xff] }
   0x4   :  { %136 = vmatprep.subr.bf16.mxu0 %v135_v3  ;;  %v110_v10 = vld [vmem:[%s194_s3] sm:$0xff] }
   0x5   :  { %138 = vmatpush3.bf16.msra.mxu0 %v135_v3 }
   0x8   :  { %133 = vmatmul.mubr.msk.f32.vlgmr.msra.gmra.mrb[0].mxu0 %vm28_vm0, %v18_v4 }
  0xdb   :  { %v134_v6 = vpop.f32.mrb[0].mxu0 }
  0xdc   :  { %v107_v8 = vadd.f32 %v134_v6, %v121_v5  ;;  %v101_v9 = vpop.f32.mrb[1].mxu0 }
  0xdd   :  { %v102_v11 = vadd.f32 %v121_v5, %v101_v9 }
  0xde   :  { %v113_v12 = vadd.f32 %v111_v7, %v107_v8 }
  0xdf   :  { %v112_v13 = vadd.f32 %v110_v10, %v102_v11 }
  0xe0   :  { %116 = vst.msk [vmem:[%s195_s4 + $0x8] sm:$0xff] %vm114_vm1, %v113_v12 }
  0xe1   :  { %115 = vst.msk [vmem:[%s195_s4] sm:$0xff] %vm114_vm1, %v112_v13 }

// kernel: transformer_classifier_forward.21
= control target key start
LH: loop header
LB: loop body
LE: loop exit
PB: predicated region body
PF: predicated region fallthrough
CT: control target
= control target key end

     0   :  { %s381_s0 = inlined_call_operand.vmem [shape: f32[2,256], index: 0, kind: input, shape index: {}]   ;;  %s382_s1 = inlined_call_operand.vmem [shape: f32[256,4], index: 1, kind: input, shape index: {}]   ;;  %s383_s2 = inlined_call_operand.vmem [shape: f32[1,4], index: 2, kind: input, shape index: {}]   ;;  %s384_s3 = inlined_call_operand.hbm [shape: f32[2,4], index: 3, kind: output, shape index: {}]  }
   0x1   :  { %v32_v0 = vld [vmem:[%s382_s1 + $0x80] sm:$0xff]  ;;  %v33_v1 = vld [vmem:[%s382_s1 + $0x88] sm:$0xff]  ;;  %v34_v5 = vld [vmem:[%s382_s1 + $0x90] sm:$0xff] }
   0x2   :  { %v16_v2 = vld [vmem:[%s382_s1] sm:$0xff]  ;;  %v189_v3 = vpack.c.bf16 %v33_v1, %v32_v0  ;;  %v17_v4 = vld [vmem:[%s382_s1 + $0x8] sm:$0xff]  ;;  %v35_v6 = vld [vmem:[%s382_s1 + $0x98] sm:$0xff] }
   0x3   :  { %v191_v7 = vpack.c.bf16 %v17_v4, %v16_v2  ;;  %v193_v8 = vpack.c.bf16 %v35_v6, %v34_v5  ;;  %v18_v9 = vld [vmem:[%s382_s1 + $0x10] sm:$0xff]  ;;  %v19_v10 = vld [vmem:[%s382_s1 + $0x18] sm:$0xff]  ;;  %v36_v11 = vld [vmem:[%s382_s1 + $0xa0] sm:$0xff] }
   0x4   :  { %190 = vmatprep.subr.bf16.mxu0 %v189_v3  ;;  %v37_v12 = vld [vmem:[%s382_s1 + $0xa8] sm:$0xff]  ;;  %v195_v13 = vpack.c.bf16 %v19_v10, %v18_v9  ;;  %v20_v15 = vld [vmem:[%s382_s1 + $0x20] sm:$0xff]  ;;  %v38_v17 = vld [vmem:[%s382_s1 + $0xb0] sm:$0xff] }
   0x5   :  { %192 = vmatpush3.bf16.msra.mxu0 %v191_v7  ;;  %v197_v14 = vpack.c.bf16 %v37_v12, %v36_v11  ;;  %v21_v16 = vld [vmem:[%s382_s1 + $0x28] sm:$0xff]  ;;  %v39_v18 = vld [vmem:[%s382_s1 + $0xb8] sm:$0xff]  ;;  %v22_v21 = vld [vmem:[%s382_s1 + $0x30] sm:$0xff] }
   0x6   :  { %194 = vmatprep.subr.bf16.mxu0 %v193_v8  ;;  %v199_v19 = vpack.c.bf16 %v21_v16, %v20_v15  ;;  %v201_v20 = vpack.c.bf16 %v39_v18, %v38_v17  ;;  %v23_v22 = vld [vmem:[%s382_s1 + $0x38] sm:$0xff]  ;;  %v40_v23 = vld [vmem:[%s382_s1 + $0xc0] sm:$0xff]  ;;  %v41_v24 = vld [vmem:[%s382_s1 + $0xc8] sm:$0xff] }
   0x7   :  { %v153_v25 = vld.sshfl [vmem:[%s381_s0] sm:$0x33 pattern:$0x76325410] }
   0x8   :  { %v63_v26 = vcombine.high %v153_v25, %v153_v25 }
   0x9   :  { %196 = vmatpush3.bf16.msra.mxu0 %v195_v13 }
   0xa   :  { %198 = vmatprep.subr.bf16.mxu0 %v197_v14 }
   0xb   :  { %8 = vsyncpa [#allocation3], 0  ;;  %v203_v27 = vpack.c.bf16 %v23_v22, %v22_v21  ;;  %v205_v28 = vpack.c.bf16 %v41_v24, %v40_v23  ;;  %v24_v29 = vld [vmem:[%s382_s1 + $0x40] sm:$0xff]  ;;  %v25_v30 = vld [vmem:[%s382_s1 + $0x48] sm:$0xff]  ;;  %130 = vmatprep.mubr.f32.mxu0 %v63_v26  ;;  %s246_s25 = smov [#allocation2]   ;;  %vm136_vm0 = vcmask 25600  }
   0xc   :  { %v42_v31 = vld [vmem:[%s382_s1 + $0xd0] sm:$0xff]  ;;  %v43_v32 = vld [vmem:[%s382_s1 + $0xd8] sm:$0xff]  ;;  %v207_v33 = vpack.c.bf16 %v25_v30, %v24_v29  ;;  %v44_v37 = vld [vmem:[%s382_s1 + $0xe0] sm:$0xff]  ;;  %s144_s26 = sshll.u32 %s246_s25, 4  ;;  %s145_s26 = int_to_ptr.vmem [resolvable:$true] %s144_s26 }
   0xd   :  { %200 = vmatpush3.bf16.msra.mxu0 %v199_v19  ;;  %v209_v34 = vpack.c.bf16 %v43_v32, %v42_v31  ;;  %v26_v35 = vld [vmem:[%s382_s1 + $0x50] sm:$0xff]  ;;  %v27_v36 = vld [vmem:[%s382_s1 + $0x58] sm:$0xff]  ;;  %v45_v38 = vld [vmem:[%s382_s1 + $0xe8] sm:$0xff]  ;;  %s222_s27 = scalar_lea.vmem %s145_s26, 32  ;;  %p227_p1 = scmp.lt.s32.totalorder %s145_s26, %s145_s26 }
   0xe   :  { %202 = vmatprep.subr.bf16.mxu0 %v201_v20  ;;  %v211_v39 = vpack.c.bf16 %v27_v36, %v26_v35  ;;  %v213_v40 = vpack.c.bf16 %v45_v38, %v44_v37  ;;  %v28_v41 = vld [vmem:[%s382_s1 + $0x60] sm:$0xff]  ;;  %v29_v42 = vld [vmem:[%s382_s1 + $0x68] sm:$0xff]  ;;  %v46_v43 = vld [vmem:[%s382_s1 + $0xf0] sm:$0xff]  ;;  %p223_p0 = scmp.ne.s32.totalorder %s145_s26, %s222_s27  ;;  %p228_p2 = scmp.lt.s32.totalorder %s222_s27, %s222_s27 }
   0xf   :  { %v47_v44 = vld [vmem:[%s382_s1 + $0xf8] sm:$0xff]  ;;  %v215_v45 = vpack.c.bf16 %v29_v42, %v28_v41  ;;  %v30_v47 = vld [vmem:[%s382_s1 + $0x70] sm:$0xff]  ;;  %v152_v51 = vld [vmem:[%s383_s2] ss:$0 sm:$0xff] }
  0x10   :  { %v217_v46 = vpack.c.bf16 %v47_v44, %v46_v43  ;;  %v31_v48 = vld [vmem:[%s382_s1 + $0x78] sm:$0xff]  ;;  %p229_p3 = por %p228_p2, %p227_p1 }
  0x11   :  { %204 = vmatpush3.bf16.msra.mxu0 %v203_v27  ;;  %v219_v49 = vpack.c.bf16 %v31_v48, %v30_v47 }
  0x12   :  { %206 = vmatprep.subr.bf16.mxu0 %v205_v28  ;;  %p230_p4 = pnand %p229_p3, %p223_p0 }
  0x15   :  { %208 = vmatpush3.bf16.msra.mxu0 %v207_v33 }
  0x16   :  { %210 = vmatprep.subr.bf16.mxu0 %v209_v34 }
  0x19   :  { %212 = vmatpush3.bf16.msra.mxu0 %v211_v39 }
  0x1a   :  { %214 = vmatprep.subr.bf16.mxu0 %v213_v40 }
  0x1d   :  { %216 = vmatpush3.bf16.msra.mxu0 %v215_v45 }
  0x1e   :  { %218 = vmatprep.subr.bf16.mxu0 %v217_v46 }
  0x21   :  { %220 = vmatpush3.bf16.msra.mxu0 %v219_v49 }
  0x24   :  { %131 = vmatmul.mubr.f32.vlgmr.msra.gmra.mrb[0].mxu0 %v153_v25 }
  0xf7   :  { %v186_v50 = vpop.f32.mrb[0].mxu0 }
  0xf8   :  { %v187_v52 = vpop.f32.mrb[1].mxu0 }
  0xf9   :  { %v188_v53 = vadd.f32 %v187_v52, %v186_v50 }
  0xfb   :  { %v133_v54 = vadd.f32 %v188_v53, %v152_v51 }
  0xfd   :  { %137 = vst.msk [vmem:[#allocation2] sm:$0x3] %vm136_vm0, %v133_v54 }
  0xfe   :  { %233 = shalt.err (!%p230_p4)
}
  0xff   :  { %s234_s0 = scalar_lea.hbm %s384_s3, 32 }
 0x100   :  { %p235_p5 = scmp.ne.s32.totalorder %s384_s3, %s234_s0  ;;  %p238_p6 = scmp.lt.u32.totalorder %s234_s0, %s384_s3 }
 0x102   :  { %p240_p7 = pnand %p238_p6, %p235_p5 }
 0x104   :  { %243 = shalt.err (!%p240_p7)
}
 0x105   :  { %147 = dma.vmem_to_hbm [thread:$0]  %s145_s26, 32, %s384_s3, [#allocation3]  }
 0x106   :  { %244 = dma.done.wait [#allocation3], 32  }
 0x107   :  { %245 = vsyncadd [#allocation3], 4294967264 }
 0x108   :  { %151 = vsyncpa [#allocation3], 1 }

// kernel: transformer_classifier_forward.13
= control target key start
LH: loop header
LB: loop body
LE: loop exit
PB: predicated region body
PF: predicated region fallthrough
CT: control target
= control target key end

     0   :  { %vm41_vm0 = vcmask 64512   ;;  %v1563_v2 = vmov 0.0   ;;  %vm1564_vm1 = vmmov 0   ;;  %s1817_s0 = inlined_call_operand.vmem [shape: f32[8,8,8], index: 0, kind: input, shape index: {}]   ;;  %s1818_s1 = inlined_call_operand.vmem [shape: f32[8,8,8], index: 1, kind: input, shape index: {}]   ;;  %s1819_s2 = inlined_call_operand.vmem [shape: f32[8,8,8], index: 2, kind: input, shape index: {}]   ;;  %s1820_s3 = inlined_call_operand.vmem [shape: f32[8,8,8], index: 3, kind: output, shape index: {0}]   ;;  %s1821_s4 = inlined_call_operand.hbm [shape: f32[8,8,8], index: 4, kind: output, shape index: {1}]  }
   0x1   :  { %v25_v0 = vld [vmem:[%s1818_s1] sm:$0xff]  ;;  %v26_v1 = vld [vmem:[%s1818_s1 + $0x8] sm:$0xff]  ;;  %1422 = vmatprep.subr.mxu0 %v1563_v2  ;;  %1424 = vmatprep.mubr.msk.f32.mxu0 %vm1564_vm1, %v1563_v2  ;;  %v27_v4 = vld [vmem:[%s1818_s1 + $0x10] sm:$0xff] }
   0x2   :  { %1423 = vmatpush3.xpose.msk.msra.mxu0 %vm41_vm0, %v25_v0  ;;  %v17_v3 = vld [vmem:[%s1817_s0] sm:$0xff]  ;;  %1427 = vmatprep.subr.mxu1 %v1563_v2  ;;  %v18_v5 = vld [vmem:[%s1817_s0 + $0x8] sm:$0xff]  ;;  %v28_v6 = vld [vmem:[%s1818_s1 + $0x18] sm:$0xff] }
   0x3   :  { %1432 = vmatprep.subr.mxu0 %v1563_v2  ;;  %1428 = vmatpush3.xpose.msk.msra.mxu1 %vm41_vm0, %v26_v1 }
   0x4   :  { %1429 = vmatprep.mubr.msk.f32.mxu1 %vm1564_vm1, %v1563_v2  ;;  %1437 = vmatprep.subr.mxu1 %v1563_v2 }
   0x5   :  { %1425 = vmatmul.mubr.msk.f32.vlgmr.msra.gmra.mrb[0].mxu0 %vm41_vm0, %v17_v3 }
   0x6   :  { %10 = vsyncpa [#allocation3], 0  ;;  %1433 = vmatpush3.xpose.msk.msra.mxu0 %vm41_vm0, %v27_v4  ;;  %1434 = vmatprep.mubr.msk.f32.mxu0 %vm1564_vm1, %v1563_v2  ;;  %v19_v7 = vld [vmem:[%s1817_s0 + $0x10] sm:$0xff]  ;;  %v29_v8 = vld [vmem:[%s1818_s1 + $0x20] sm:$0xff] }
   0x7   :  { %1430 = vmatmul.mubr.msk.f32.vlgmr.msra.gmra.mrb[0].mxu1 %vm41_vm0, %v18_v5  ;;  %1442 = vmatprep.subr.mxu0 %v1563_v2  ;;  %v20_v9 = vld [vmem:[%s1817_s0 + $0x18] sm:$0xff]  ;;  %v30_v10 = vld [vmem:[%s1818_s1 + $0x28] sm:$0xff]  ;;  %v21_v11 = vld [vmem:[%s1817_s0 + $0x20] sm:$0xff] }
   0x8   :  { %1438 = vmatpush3.xpose.msk.msra.mxu1 %vm41_vm0, %v28_v6  ;;  %1439 = vmatprep.mubr.msk.f32.mxu1 %vm1564_vm1, %v1563_v2  ;;  %v31_v12 = vld [vmem:[%s1818_s1 + $0x30] sm:$0xff]  ;;  %v22_v13 = vld [vmem:[%s1817_s0 + $0x28] sm:$0xff]  ;;  %v32_v14 = vld [vmem:[%s1818_s1 + $0x38] sm:$0xff] }
   0x9   :  { %1435 = vmatmul.mubr.msk.f32.vlgmr.msra.gmra.mrb[2].mxu0 %vm41_vm0, %v19_v7  ;;  %1447 = vmatprep.subr.mxu1 %v1563_v2  ;;  %v23_v15 = vld [vmem:[%s1817_s0 + $0x30] sm:$0xff]  ;;  %v24_v16 = vld [vmem:[%s1817_s0 + $0x38] sm:$0xff] }
   0xa   :  { %1443 = vmatpush3.xpose.msk.msra.mxu0 %vm41_vm0, %v29_v8  ;;  %1444 = vmatprep.mubr.msk.f32.mxu0 %vm1564_vm1, %v1563_v2 }
   0xb   :  { %1440 = vmatmul.mubr.msk.f32.vlgmr.msra.gmra.mrb[2].mxu1 %vm41_vm0, %v20_v9  ;;  %1452 = vmatprep.subr.mxu0 %v1563_v2 }
   0xc   :  { %1448 = vmatpush3.xpose.msk.msra.mxu1 %vm41_vm0, %v30_v10  ;;  %1449 = vmatprep.mubr.msk.f32.mxu1 %vm1564_vm1, %v1563_v2 }
   0xd   :  { %1445 = vmatmul.mubr.msk.f32.vlgmr.msra.gmra.mrb[4].mxu0 %vm41_vm0, %v21_v11  ;;  %1457 = vmatprep.subr.mxu1 %v1563_v2 }
   0xe   :  { %1453 = vmatpush3.xpose.msk.msra.mxu0 %vm41_vm0, %v31_v12  ;;  %1454 = vmatprep.mubr.msk.f32.mxu0 %vm1564_vm1, %v1563_v2 }
   0xf   :  { %1450 = vmatmul.mubr.msk.f32.vlgmr.msra.gmra.mrb[4].mxu1 %vm41_vm0, %v22_v13  ;;  %1462 = vmatprep.subr.mxu0 %v1563_v2 }
  0x10   :  { %1458 = vmatpush3.xpose.msk.msra.mxu1 %vm41_vm0, %v32_v14  ;;  %1459 = vmatprep.mubr.msk.f32.mxu1 %vm1564_vm1, %v1563_v2 }
  0x11   :  { %1455 = vmatmul.mubr.msk.f32.vlgmr.msra.gmra.mrb[6].mxu0 %vm41_vm0, %v23_v15  ;;  %1467 = vmatprep.subr.mxu1 %v1563_v2 }
  0x12   :  { %1464 = vmatprep.mubr.msk.f32.mxu0 %vm1564_vm1, %v1563_v2 }
  0x13   :  { %1460 = vmatmul.mubr.msk.f32.vlgmr.msra.gmra.mrb[6].mxu1 %vm41_vm0, %v24_v16 }
  0x14   :  { %1469 = vmatprep.mubr.msk.f32.mxu1 %vm1564_vm1, %v1563_v2 }
  0xd8   :  { %v114_v17 = vpop.f32.mrb[0].mxu0 }
  0xd9   :  { %v650_v18 = vmul.f32 0.35355338, %v114_v17  ;;  %v1426_v19 = vpop.f32.mrb[1].mxu0 }
  0xda   :  { %v190_v20 = vpop.f32.mrb[0].mxu1 }
  0xdb   :  { %v651_v21 = vmul.f32 0.35355338, %v190_v20  ;;  %v658_v22 = vsel %vm41_vm0, %v650_v18, -inf  ;;  %v1431_v23 = vpop.f32.mrb[1].mxu1 }
  0xdc   :  { %659 = vmax.xlane.f32.xlu0 %v658_v22  ;;  %v266_v24 = vpop.f32.mrb[2].mxu0 }
  0xdd   :  { %v652_v25 = vmul.f32 0.35355338, %v266_v24  ;;  %v1436_v26 = vpop.f32.mrb[3].mxu0  ;;  %v661_v27 = vsel %vm41_vm0, %v651_v21, -inf }
  0xde   :  { %v342_v28 = vpop.f32.mrb[2].mxu1  ;;  %v33_v26 = vld [vmem:[%s1819_s2] sm:$0xff] }
  0xdf   :  { %v653_v29 = vmul.f32 0.35355338, %v342_v28  ;;  %v664_v30 = vsel %vm41_vm0, %v652_v25, -inf  ;;  %v1441_v31 = vpop.f32.mrb[3].mxu1  ;;  %1463 = vmatpush3.msra.mxu0 %v33_v26 }
  0xe0   :  { %662 = vmax.xlane.f32.xlu0 %v661_v27  ;;  %665 = vmax.xlane.f32.xlu1 %v664_v30  ;;  %v418_v32 = vpop.f32.mrb[4].mxu0  ;;  %v34_v27 = vld [vmem:[%s1819_s2 + $0x8] sm:$0xff] }
  0xe1   :  { %v654_v33 = vmul.f32 0.35355338, %v418_v32  ;;  %v1446_v34 = vpop.f32.mrb[5].mxu0  ;;  %v667_v35 = vsel %vm41_vm0, %v653_v29, -inf  ;;  %1472 = vmatprep.subr.mxu0 %v1563_v2  ;;  %1468 = vmatpush3.msra.mxu1 %v34_v27 }
  0xe2   :  { %v494_v36 = vpop.f32.mrb[4].mxu1  ;;  %1477 = vmatprep.subr.mxu1 %v1563_v2 }
  0xe3   :  { %v655_v37 = vmul.f32 0.35355338, %v494_v36  ;;  %v670_v38 = vsel %vm41_vm0, %v654_v33, -inf  ;;  %v1451_v39 = vpop.f32.mrb[5].mxu1  ;;  %v35_v36 = vld [vmem:[%s1819_s2 + $0x10] sm:$0xff] }
  0xe4   :  { %668 = vmax.xlane.f32.xlu1 %v667_v35  ;;  %671 = vmax.xlane.f32.xlu0 %v670_v38  ;;  %v570_v40 = vpop.f32.mrb[6].mxu0 }
  0xe5   :  { %v656_v41 = vmul.f32 0.35355338, %v570_v40  ;;  %v673_v42 = vsel %vm41_vm0, %v655_v37, -inf  ;;  %v1456_v43 = vpop.f32.mrb[7].mxu0 }
  0xe6   :  { %v646_v44 = vpop.f32.mrb[6].mxu1 }
  0xe7   :  { %v657_v45 = vmul.f32 0.35355338, %v646_v44  ;;  %v676_v46 = vsel %vm41_vm0, %v656_v41, -inf  ;;  %v1461_v47 = vpop.f32.mrb[7].mxu1  ;;  %v37_v44 = vld [vmem:[%s1819_s2 + $0x20] sm:$0xff] }
  0xe8   :  { %674 = vmax.xlane.f32.xlu1 %v673_v42  ;;  %677 = vmax.xlane.f32.xlu0 %v676_v46  ;;  %v36_v42 = vld [vmem:[%s1819_s2 + $0x18] sm:$0xff] }
  0xe9   :  { %v679_v48 = vsel %vm41_vm0, %v657_v45, -inf }
  0xec   :  { %680 = vmax.xlane.f32.xlu1 %v679_v48  ;;  %v38_v48 = vld [vmem:[%s1819_s2 + $0x28] sm:$0xff] }
 0x169   :  { %v660_v49 = vpop.xlane.xlu0 %659 }
 0x16a   :  { %v682_v50 = vsub.f32 %v650_v18, %v660_v49 }
 0x16c   :  { %v690_v51 = vmul.f32 1.442695, %v682_v50  ;;  %v39_v50 = vld [vmem:[%s1819_s2 + $0x30] sm:$0xff] }
 0x16d   :  { %v663_v52 = vpop.xlane.xlu0 %662  ;;  %v666_v53 = vpop.xlane.xlu1 %665 }
 0x16e   :  { %1507 = vpow2.f32 %v690_v51  ;;  %v683_v54 = vsub.f32 %v651_v21, %v663_v52  ;;  %v684_v55 = vsub.f32 %v652_v25, %v666_v53 }
 0x170   :  { %v692_v56 = vmul.f32 1.442695, %v683_v54  ;;  %v694_v57 = vmul.f32 1.442695, %v684_v55  ;;  %v40_v54 = vld [vmem:[%s1819_s2 + $0x38] sm:$0xff]  ;;  %s1565_s2 = smov [#allocation2]  }
 0x171   :  { %v669_v58 = vpop.xlane.xlu1 %668  ;;  %v672_v59 = vpop.xlane.xlu0 %671  ;;  %s1353_s9 = sshll.u32 %s1565_s2, 4  ;;  %s1354_s9 = int_to_ptr.vmem [resolvable:$true] %s1353_s9 }
 0x172   :  { %1509 = vpow2.f32 %v692_v56  ;;  %v685_v60 = vsub.f32 %v653_v29, %v669_v58  ;;  %v686_v61 = vsub.f32 %v654_v33, %v672_v59  ;;  %s1539_s10 = scalar_lea.vmem %s1354_s9, 1024  ;;  %p1544_p1 = scmp.lt.s32.totalorder %s1354_s9, %s1354_s9 }
 0x173   :  { %1511 = vpow2.f32 %v694_v57  ;;  %p1540_p0 = scmp.ne.s32.totalorder %s1354_s9, %s1539_s10  ;;  %p1545_p2 = scmp.lt.s32.totalorder %s1539_s10, %s1539_s10 }
 0x174   :  { %v696_v62 = vmul.f32 1.442695, %v685_v60  ;;  %v698_v63 = vmul.f32 1.442695, %v686_v61 }
 0x175   :  { %v675_v0 = vpop.xlane.xlu1 %674  ;;  %v678_v1 = vpop.xlane.xlu0 %677  ;;  %p1546_p3 = por %p1545_p2, %p1544_p1 }
 0x176   :  { %1513 = vpow2.f32 %v696_v62  ;;  %v687_v3 = vsub.f32 %v655_v37, %v675_v0  ;;  %v688_v4 = vsub.f32 %v656_v41, %v678_v1 }
 0x177   :  { %1515 = vpow2.f32 %v698_v63  ;;  %p1547_p4 = pnand %p1546_p3, %p1540_p0 }
 0x178   :  { %v1508_v5 = vpop.eup %1507  ;;  %v700_v6 = vmul.f32 1.442695, %v687_v3  ;;  %v702_v7 = vmul.f32 1.442695, %v688_v4 }
 0x179   :  { %v681_v8 = vpop.xlane.xlu1 %680  ;;  %v706_v9 = vsel %vm41_vm0, %v1508_v5, 0.0 }
 0x17a   :  { %1517 = vpow2.f32 %v700_v6  ;;  %v689_v10 = vsub.f32 %v657_v45, %v681_v8  ;;  %707 = vadd.xlane.f32.xlu0 %v706_v9 }
 0x17b   :  { %1519 = vpow2.f32 %v702_v7 }
 0x17c   :  { %v1510_v11 = vpop.eup %1509  ;;  %v704_v12 = vmul.f32 1.442695, %v689_v10 }
 0x17d   :  { %v1512_v13 = vpop.eup %1511  ;;  %v709_v14 = vsel %vm41_vm0, %v1510_v11, 0.0 }
 0x17e   :  { %1521 = vpow2.f32 %v704_v12  ;;  %710 = vadd.xlane.f32.xlu1 %v709_v14  ;;  %v712_v15 = vsel %vm41_vm0, %v1512_v13, 0.0 }
 0x17f   :  { %713 = vadd.xlane.f32.xlu0 %v712_v15 }
 0x180   :  { %v1514_v16 = vpop.eup %1513 }
 0x181   :  { %v1516_v17 = vpop.eup %1515  ;;  %v715_v18 = vsel %vm41_vm0, %v1514_v16, 0.0 }
 0x182   :  { %716 = vadd.xlane.f32.xlu1 %v715_v18  ;;  %v718_v19 = vsel %vm41_vm0, %v1516_v17, 0.0 }
 0x183   :  { %719 = vadd.xlane.f32.xlu0 %v718_v19 }
 0x184   :  { %v1700_v20 = vpop.eup %1517 }
 0x185   :  { %v1702_v21 = vpop.eup %1519  ;;  %v721_v22 = vsel %vm41_vm0, %v1700_v20, 0.0 }
 0x186   :  { %722 = vadd.xlane.f32.xlu1 %v721_v22  ;;  %v724_v23 = vsel %vm41_vm0, %v1702_v21, 0.0 }
 0x187   :  { %725 = vadd.xlane.f32.xlu0 %v724_v23 }
 0x188   :  { %v1708_v24 = vpop.eup %1521 }
 0x189   :  { %v727_v25 = vsel %vm41_vm0, %v1708_v24, 0.0 }
 0x18a   :  { %728 = vadd.xlane.f32.xlu1 %v727_v25 }
 0x207   :  { %v708_v28 = vpop.xlane.xlu0 %707 }
 0x208   :  { %1523 = vrcp.f32 %v708_v28 }
 0x20b   :  { %v711_v29 = vpop.xlane.xlu1 %710 }
 0x20c   :  { %1525 = vrcp.f32 %v711_v29  ;;  %v714_v30 = vpop.xlane.xlu0 %713 }
 0x20d   :  { %1527 = vrcp.f32 %v714_v30 }
 0x20f   :  { %v717_v31 = vpop.xlane.xlu1 %716 }
 0x210   :  { %1529 = vrcp.f32 %v717_v31  ;;  %v720_v32 = vpop.xlane.xlu0 %719 }
 0x211   :  { %1531 = vrcp.f32 %v720_v32 }
 0x212   :  { %v1524_v33 = vpop.eup %1523 }
 0x213   :  { %v738_v34 = vmul.f32 %v1524_v33, %v1508_v5  ;;  %v723_v35 = vpop.xlane.xlu1 %722 }
 0x214   :  { %1533 = vrcp.f32 %v723_v35  ;;  %v726_v37 = vpop.xlane.xlu0 %725 }
 0x215   :  { %746 = vst.msk [vmem:[#allocation2] sm:$0xff] %vm41_vm0, %v738_v34  ;;  %1535 = vrcp.f32 %v726_v37  ;;  %1465 = vmatmul.mubr.msk.f32.vlgmr.msra.gmra.mrb[8].mxu0 %vm41_vm0, %v738_v34 }
 0x216   :  { %v1526_v38 = vpop.eup %1525  ;;  %1473 = vmatpush3.msra.mxu0 %v35_v36  ;;  %1474 = vmatprep.mubr.msk.f32.mxu0 %vm1564_vm1, %v1563_v2 }
 0x217   :  { %v1528_v39 = vpop.eup %1527  ;;  %v739_v40 = vmul.f32 %v1526_v38, %v1510_v11  ;;  %v729_v41 = vpop.xlane.xlu1 %728  ;;  %1482 = vmatprep.subr.mxu0 %v1563_v2 }
 0x218   :  { %v740_v43 = vmul.f32 %v1528_v39, %v1512_v13  ;;  %1537 = vrcp.f32 %v729_v41 }
 0x219   :  { %747 = vst.msk [vmem:[#allocation2 + $0x8] sm:$0xff] %vm41_vm0, %v739_v40  ;;  %1470 = vmatmul.mubr.msk.f32.vlgmr.msra.gmra.mrb[8].mxu1 %vm41_vm0, %v739_v40 }
 0x21a   :  { %v1530_v45 = vpop.eup %1529  ;;  %748 = vst.msk [vmem:[#allocation2 + $0x10] sm:$0xff] %vm41_vm0, %v740_v43  ;;  %1475 = vmatmul.mubr.msk.f32.vlgmr.msra.gmra.mrb[10].mxu0 %vm41_vm0, %v740_v43  ;;  %1478 = vmatpush3.msra.mxu1 %v36_v42 }
 0x21b   :  { %v1532_v46 = vpop.eup %1531  ;;  %v741_v47 = vmul.f32 %v1530_v45, %v1514_v16  ;;  %1479 = vmatprep.mubr.msk.f32.mxu1 %vm1564_vm1, %v1563_v2  ;;  %1483 = vmatpush3.msra.mxu0 %v37_v44 }
 0x21c   :  { %v742_v49 = vmul.f32 %v1532_v46, %v1516_v17  ;;  %1484 = vmatprep.mubr.msk.f32.mxu0 %vm1564_vm1, %v1563_v2  ;;  %1487 = vmatprep.subr.mxu1 %v1563_v2 }
 0x21d   :  { %749 = vst.msk [vmem:[#allocation2 + $0x18] sm:$0xff] %vm41_vm0, %v741_v47  ;;  %1480 = vmatmul.mubr.msk.f32.vlgmr.msra.gmra.mrb[10].mxu1 %vm41_vm0, %v741_v47  ;;  %1492 = vmatprep.subr.mxu0 %v1563_v2 }
 0x21e   :  { %v1534_v51 = vpop.eup %1533  ;;  %750 = vst.msk [vmem:[#allocation2 + $0x20] sm:$0xff] %vm41_vm0, %v742_v49  ;;  %1485 = vmatmul.mubr.msk.f32.vlgmr.msra.gmra.mrb[12].mxu0 %vm41_vm0, %v742_v49  ;;  %1488 = vmatpush3.msra.mxu1 %v38_v48 }
 0x21f   :  { %v1536_v52 = vpop.eup %1535  ;;  %v743_v53 = vmul.f32 %v1534_v51, %v1700_v20  ;;  %1489 = vmatprep.mubr.msk.f32.mxu1 %vm1564_vm1, %v1563_v2  ;;  %1493 = vmatpush3.msra.mxu0 %v39_v50 }
 0x220   :  { %v744_v55 = vmul.f32 %v1536_v52, %v1702_v21  ;;  %1494 = vmatprep.mubr.msk.f32.mxu0 %vm1564_vm1, %v1563_v2  ;;  %1497 = vmatprep.subr.mxu1 %v1563_v2 }
 0x221   :  { %751 = vst.msk [vmem:[#allocation2 + $0x28] sm:$0xff] %vm41_vm0, %v743_v53  ;;  %1490 = vmatmul.mubr.msk.f32.vlgmr.msra.gmra.mrb[12].mxu1 %vm41_vm0, %v743_v53 }
 0x222   :  { %v1538_v56 = vpop.eup %1537  ;;  %752 = vst.msk [vmem:[#allocation2 + $0x30] sm:$0xff] %vm41_vm0, %v744_v55  ;;  %1495 = vmatmul.mubr.msk.f32.vlgmr.msra.gmra.mrb[14].mxu0 %vm41_vm0, %v744_v55  ;;  %1498 = vmatpush3.msra.mxu1 %v40_v54 }
 0x223   :  { %v745_v57 = vmul.f32 %v1538_v56, %v1708_v24  ;;  %1499 = vmatprep.mubr.msk.f32.mxu1 %vm1564_vm1, %v1563_v2 }
 0x225   :  { %753 = vst.msk [vmem:[#allocation2 + $0x38] sm:$0xff] %vm41_vm0, %v745_v57  ;;  %1500 = vmatmul.mubr.msk.f32.vlgmr.msra.gmra.mrb[14].mxu1 %vm41_vm0, %v745_v57 }
 0x226   :  { %1550 = shalt.err (!%p1547_p4)
}
 0x227   :  { %s1551_s13 = scalar_lea.hbm %s1821_s4, 1024 }
 0x228   :  { %p1552_p5 = scmp.ne.s32.totalorder %s1821_s4, %s1551_s13  ;;  %p1555_p6 = scmp.lt.u32.totalorder %s1551_s13, %s1821_s4 }
 0x22a   :  { %p1557_p7 = pnand %p1555_p6, %p1552_p5 }
 0x22c   :  { %1560 = shalt.err (!%p1557_p7)
}
 0x22d   :  { %s1566_s18 = smov 128   ;;  %s1567_s19 = smov 8  }
 0x22e   :  { %1359 = dma.vmem_to_hbm [thread:$0]  %s1354_s9, 1024, %s1821_s4, [#allocation3], %s1566_s18, %s1566_s18, %s1567_s19  }
 0x2e8   :  { %v823_v2 = vpop.f32.mrb[8].mxu0 }
 0x2e9   :  { %1338 = vst.msk [vmem:[%s1820_s3] sm:$0xff] %vm41_vm0, %v823_v2  ;;  %v1466_v58 = vpop.f32.mrb[9].mxu0 }
 0x2ec   :  { %v896_v59 = vpop.f32.mrb[8].mxu1 }
 0x2ed   :  { %1339 = vst.msk [vmem:[%s1820_s3 + $0x8] sm:$0xff] %vm41_vm0, %v896_v59  ;;  %v969_v60 = vpop.f32.mrb[10].mxu0  ;;  %v1471_v61 = vpop.f32.mrb[9].mxu1 }
 0x2ee   :  { %1340 = vst.msk [vmem:[%s1820_s3 + $0x10] sm:$0xff] %vm41_vm0, %v969_v60  ;;  %v1476_v62 = vpop.f32.mrb[11].mxu0 }
 0x2f0   :  { %v1042_v63 = vpop.f32.mrb[10].mxu1 }
 0x2f1   :  { %1341 = vst.msk [vmem:[%s1820_s3 + $0x18] sm:$0xff] %vm41_vm0, %v1042_v63  ;;  %v1115_v0 = vpop.f32.mrb[12].mxu0  ;;  %v1481_v1 = vpop.f32.mrb[11].mxu1 }
 0x2f2   :  { %1342 = vst.msk [vmem:[%s1820_s3 + $0x20] sm:$0xff] %vm41_vm0, %v1115_v0  ;;  %v1486_v3 = vpop.f32.mrb[13].mxu0 }
 0x2f4   :  { %v1188_v4 = vpop.f32.mrb[12].mxu1 }
 0x2f5   :  { %1343 = vst.msk [vmem:[%s1820_s3 + $0x28] sm:$0xff] %vm41_vm0, %v1188_v4  ;;  %v1261_v5 = vpop.f32.mrb[14].mxu0  ;;  %v1491_v6 = vpop.f32.mrb[13].mxu1 }
 0x2f6   :  { %1344 = vst.msk [vmem:[%s1820_s3 + $0x30] sm:$0xff] %vm41_vm0, %v1261_v5  ;;  %v1496_v7 = vpop.f32.mrb[15].mxu0 }
 0x2f8   :  { %v1334_v8 = vpop.f32.mrb[14].mxu1 }
 0x2f9   :  { %1345 = vst.msk [vmem:[%s1820_s3 + $0x38] sm:$0xff] %vm41_vm0, %v1334_v8  ;;  %v1501_v9 = vpop.f32.mrb[15].mxu1 }
 0x2fa   :  { %1561 = dma.done.wait [#allocation3], 1024  }
 0x2fb   :  { %1562 = vsyncadd [#allocation3], 4294966272 }
 0x2fc   :  { %1365 = vsyncpa [#allocation3], 1 }

// kernel: transformer_classifier_forward.14
= control target key start
LH: loop header
LB: loop body
LE: loop exit
PB: predicated region body
PF: predicated region fallthrough
CT: control target
= control target key end

     0   :  { %vm56_vm0 = vcmask 261120   ;;  %vm294_vm1 = vcmask 523264   ;;  %s710_s2 = inlined_call_operand.vmem [shape: f32[32,32], index: 2, kind: input, shape index: {}]   ;;  %s711_s1 = inlined_call_operand.vmem [shape: f32[16,32], index: 1, kind: input, shape index: {}]   ;;  %s712_s3 = inlined_call_operand.vmem [shape: f32[1,32], index: 3, kind: input, shape index: {}]   ;;  %s713_s0 = inlined_call_operand.vmem [shape: f32[16,32], index: 0, kind: input, shape index: {}]   ;;  %s714_s6 = inlined_call_operand.vmem [shape: f32[32,64], index: 6, kind: input, shape index: {}]   ;;  %s715_s8 = inlined_call_operand.vmem [shape: f32[64,32], index: 8, kind: input, shape index: {}]   ;;  %s716_s4 = inlined_call_operand.vmem [shape: f32[1,32], index: 4, kind: input, shape index: {}]   ;;  %s717_s5 = inlined_call_operand.vmem [shape: f32[1,32], index: 5, kind: input, shape index: {}]   ;;  %s718_s7 = inlined_call_operand.vmem [shape: f32[1,64], index: 7, kind: input, shape index: {}]   ;;  %s719_s9 = inlined_call_operand.vmem [shape: f32[1,32], index: 9, kind: input, shape index: {}]   ;;  %s720_s10 = inlined_call_operand.vmem [shape: f32[1,32], index: 10, kind: input, shape index: {}]   ;;  %s721_s11 = inlined_call_operand.vmem [shape: f32[1,32], index: 11, kind: input, shape index: {}]   ;;  %s722_s12 = inlined_call_operand.vmem [shape: f32[16,32], index: 12, kind: output, shape index: {}]  }
   0x1   :  { %v45_v0 = vld [vmem:[%s710_s2] sm:$0xff]  ;;  %v46_v1 = vld [vmem:[%s710_s2 + $0x8] sm:$0xff]  ;;  %v47_v2 = vld [vmem:[%s710_s2 + $0x10] sm:$0xff] }
   0x2   :  { %v504_v3 = vpack.c.bf16 %v46_v1, %v45_v0  ;;  %v48_v4 = vld [vmem:[%s710_s2 + $0x18] sm:$0xff]  ;;  %v43_v5 = vld [vmem:[%s711_s1] sm:$0xff]  ;;  %v44_v7 = vld [vmem:[%s711_s1 + $0x8] sm:$0xff] }
   0x3   :  { %v508_v6 = vpack.c.bf16 %v48_v4, %v47_v2  ;;  %471 = vmatprep.mubr.msk.f32.mxu1 %vm56_vm0, %v43_v5  ;;  %v428_v8 = vld [vmem:[%s712_s3] ss:$0 sm:$0xff]  ;;  %v42_v14 = vld [vmem:[%s713_s0 + $0x8] sm:$0xff]  ;;  %v187_v32 = vld [vmem:[%s714_s6 + $0x10] sm:$0xff] }
   0x4   :  { %505 = vmatprep.subr.bf16.mxu1 %v504_v3  ;;  %v41_v11 = vld [vmem:[%s713_s0] sm:$0xff]  ;;  %v186_v30 = vld [vmem:[%s714_s6 + $0x8] sm:$0xff]  ;;  %v188_v33 = vld [vmem:[%s714_s6 + $0x18] sm:$0xff] }
   0x5   :  { %507 = vmatpush3.bf16.msra.mxu1 %v504_v3  ;;  %v185_v29 = vld [vmem:[%s714_s6] sm:$0xff]  ;;  %v516_v34 = vpack.c.bf16 %v188_v33, %v187_v32  ;;  %v280_v36 = vld [vmem:[%s715_s8 + $0x8] sm:$0xff]  ;;  %v281_v37 = vld [vmem:[%s715_s8 + $0x10] sm:$0xff] }
   0x6   :  { %509 = vmatprep.subr.bf16.mxu1 %v508_v6  ;;  %v512_v31 = vpack.c.bf16 %v186_v30, %v185_v29  ;;  %v279_v35 = vld [vmem:[%s715_s8] sm:$0xff]  ;;  %v282_v39 = vld [vmem:[%s715_s8 + $0x18] sm:$0xff]  ;;  %v284_v42 = vld [vmem:[%s715_s8 + $0x28] sm:$0xff] }
   0x7   :  { %v520_v38 = vpack.c.bf16 %v280_v36, %v279_v35  ;;  %v524_v40 = vpack.c.bf16 %v282_v39, %v281_v37  ;;  %v283_v41 = vld [vmem:[%s715_s8 + $0x20] sm:$0xff]  ;;  %v285_v60 = vld [vmem:[%s715_s8 + $0x30] sm:$0xff]  ;;  %v286_v61 = vld [vmem:[%s715_s8 + $0x38] sm:$0xff] }
   0x8   :  { %v528_v43 = vpack.c.bf16 %v284_v42, %v283_v41  ;;  %v431_v51 = vld [vmem:[%s716_s4] ss:$0 sm:$0xff]  ;;  %v532_v62 = vpack.c.bf16 %v286_v61, %v285_v60 }
   0x9   :  { %511 = vmatpush3.bf16.msra.mxu1 %v508_v6  ;;  %521 = vmatprep.subr.bf16.mxu0 %v520_v38  ;;  %v432_v53 = vld [vmem:[%s717_s5] ss:$0 sm:$0xff] }
   0xa   :  { %513 = vmatprep.subr.bf16.mxu1 %v512_v31  ;;  %523 = vmatpush3.bf16.msra.mxu0 %v520_v38  ;;  %v433_v63 = vld [vmem:[%s718_s7] ss:$0 sm:$0xff] }
   0xb   :  { %525 = vmatprep.subr.bf16.mxu0 %v524_v40  ;;  %v436_v6 = vld [vmem:[%s719_s9] ss:$0 sm:$0xff] }
   0xc   :  { %472 = vmatmul.mubr.msk.f32.vlgmr.msra.gmra.mrb[0].mxu1 %vm56_vm0, %v44_v7  ;;  %v439_v32 = vld [vmem:[%s720_s10] ss:$0 sm:$0xff] }
   0xd   :  { %515 = vmatpush3.bf16.msra.mxu1 %v512_v31  ;;  %v440_v35 = vld [vmem:[%s721_s11] ss:$0 sm:$0xff] }
   0xe   :  { %517 = vmatprep.subr.bf16.mxu1 %v516_v34  ;;  %527 = vmatpush3.bf16.msra.mxu0 %v524_v40 }
   0xf   :  { %529 = vmatprep.subr.bf16.mxu0 %v528_v43 }
  0x11   :  { %519 = vmatpush3.bf16.msra.mxu1 %v516_v34 }
  0x12   :  { %531 = vmatpush3.bf16.msra.mxu0 %v528_v43 }
  0x13   :  { %533 = vmatprep.subr.bf16.mxu0 %v532_v62 }
  0x16   :  { %535 = vmatpush3.bf16.msra.mxu0 %v532_v62 }
  0xdf   :  { %v473_v9 = vpop.f32.mrb[0].mxu1 }
  0xe0   :  { %v129_v10 = vpop.f32.mrb[1].mxu1  ;;  %v135_v12 = vadd.f32 %v473_v9, %v428_v8 }
  0xe1   :  { %v130_v13 = vadd.f32 %v428_v8, %v129_v10 }
  0xe2   :  { %v139_v17 = vadd.f32 %v135_v12, %v42_v14 }
  0xe3   :  { %v138_v15 = vadd.f32 %v130_v13, %v41_v11 }
  0xe4   :  { %v145_v18 = vsel %vm56_vm0, %v139_v17, 0.0 }
  0xe5   :  { %v142_v16 = vsel %vm56_vm0, %v138_v15, 0.0 }
  0xe6   :  { %143 = vadd.xlane.f32.xlu0 %v142_v16 }
  0xea   :  { %146 = vadd.xlane.f32.xlu0 %v145_v18 }
 0x173   :  { %v144_v19 = vpop.xlane.xlu0 %143 }
 0x174   :  { %v149_v20 = vmul.f32 0.03125, %v144_v19 }
 0x176   :  { %v151_v21 = vsub.f32 %v138_v15, %v149_v20 }
 0x177   :  { %v147_v22 = vpop.xlane.xlu0 %146 }
 0x178   :  { %v150_v23 = vmul.f32 0.03125, %v147_v22  ;;  %v153_v24 = vmul.f32 %v151_v21, %v151_v21 }
 0x17a   :  { %v152_v25 = vsub.f32 %v139_v17, %v150_v23  ;;  %v155_v26 = vsel %vm56_vm0, %v153_v24, 0.0 }
 0x17b   :  { %156 = vadd.xlane.f32.xlu1 %v155_v26 }
 0x17c   :  { %v154_v27 = vmul.f32 %v152_v25, %v152_v25 }
 0x17e   :  { %v158_v28 = vsel %vm56_vm0, %v154_v27, 0.0 }
 0x17f   :  { %159 = vadd.xlane.f32.xlu1 %v158_v28 }
 0x208   :  { %v157_v44 = vpop.xlane.xlu1 %156 }
 0x209   :  { %v161_v45 = vmul.f32 0.03125, %v157_v44 }
 0x20b   :  { %v163_v46 = vadd.f32 1e-05, %v161_v45 }
 0x20c   :  { %v160_v47 = vpop.xlane.xlu1 %159 }
 0x20d   :  { %536 = vrsqrt.f32 %v163_v46  ;;  %v162_v48 = vmul.f32 0.03125, %v160_v47 }
 0x20f   :  { %v164_v49 = vadd.f32 1e-05, %v162_v48 }
 0x211   :  { %538 = vrsqrt.f32 %v164_v49 }
 0x217   :  { %v537_v50 = vpop.eup %536 }
 0x218   :  { %v167_v52 = vmul.f32 %v537_v50, %v151_v21 }
 0x21a   :  { %v175_v54 = vmul.f32 %v431_v51, %v167_v52 }
 0x21b   :  { %v539_v55 = vpop.eup %538 }
 0x21c   :  { %v168_v56 = vmul.f32 %v539_v55, %v152_v25  ;;  %v183_v57 = vadd.f32 %v432_v53, %v175_v54 }
 0x21e   :  { %v176_v58 = vmul.f32 %v431_v51, %v168_v56  ;;  %482 = vmatprep.mubr.msk.f32.mxu1 %vm56_vm0, %v183_v57 }
 0x220   :  { %v184_v59 = vadd.f32 %v432_v53, %v176_v58 }
 0x222   :  { %483 = vmatmul.mubr.msk.f32.vlgmr.msra.gmra.mrb[2].mxu1 %vm56_vm0, %v184_v59 }
 0x2f5   :  { %v484_v0 = vpop.f32.mrb[2].mxu1 }
 0x2f6   :  { %v274_v1 = vadd.f32 %v484_v0, %v433_v63  ;;  %v268_v2 = vpop.f32.mrb[3].mxu1 }
 0x2f7   :  { %v269_v3 = vadd.f32 %v433_v63, %v268_v2 }
 0x2f8   :  { %v278_v5 = vmax.f32 %v274_v1, 0.0 }
 0x2f9   :  { %v277_v4 = vmax.f32 %v269_v3, 0.0 }
 0x2fb   :  { %501 = vmatprep.mubr.msk.f32.mxu0 %vm294_vm1, %v277_v4 }
 0x2fc   :  { %502 = vmatmul.mubr.msk.f32.vlgmr.msra.gmra.mrb[0].mxu0 %vm294_vm1, %v278_v5 }
 0x3cf   :  { %v503_v7 = vpop.f32.mrb[0].mxu0 }
 0x3d0   :  { %v373_v8 = vadd.f32 %v503_v7, %v436_v6  ;;  %v367_v9 = vpop.f32.mrb[1].mxu0 }
 0x3d1   :  { %v368_v10 = vadd.f32 %v436_v6, %v367_v9 }
 0x3d2   :  { %v377_v11 = vadd.f32 %v373_v8, %v184_v59 }
 0x3d3   :  { %v376_v12 = vadd.f32 %v368_v10, %v183_v57 }
 0x3d4   :  { %v383_v13 = vsel %vm56_vm0, %v377_v11, 0.0 }
 0x3d5   :  { %384 = vadd.xlane.f32.xlu1 %v383_v13  ;;  %v380_v14 = vsel %vm56_vm0, %v376_v12, 0.0 }
 0x3d6   :  { %381 = vadd.xlane.f32.xlu0 %v380_v14 }
 0x462   :  { %v385_v15 = vpop.xlane.xlu1 %384 }
 0x463   :  { %v387_v16 = vmul.f32 0.03125, %v385_v15  ;;  %v382_v17 = vpop.xlane.xlu0 %381 }
 0x464   :  { %v386_v18 = vmul.f32 0.03125, %v382_v17 }
 0x465   :  { %v389_v19 = vsub.f32 %v377_v11, %v387_v16 }
 0x466   :  { %v388_v20 = vsub.f32 %v376_v12, %v386_v18 }
 0x467   :  { %v391_v21 = vmul.f32 %v389_v19, %v389_v19 }
 0x468   :  { %v390_v22 = vmul.f32 %v388_v20, %v388_v20 }
 0x469   :  { %v395_v23 = vsel %vm56_vm0, %v391_v21, 0.0 }
 0x46a   :  { %396 = vadd.xlane.f32.xlu1 %v395_v23  ;;  %v392_v24 = vsel %vm56_vm0, %v390_v22, 0.0 }
 0x46b   :  { %393 = vadd.xlane.f32.xlu0 %v392_v24 }
 0x4f7   :  { %v397_v25 = vpop.xlane.xlu1 %396 }
 0x4f8   :  { %v399_v26 = vmul.f32 0.03125, %v397_v25  ;;  %v394_v27 = vpop.xlane.xlu0 %393 }
 0x4f9   :  { %v398_v28 = vmul.f32 0.03125, %v394_v27 }
 0x4fa   :  { %v401_v29 = vadd.f32 1e-05, %v399_v26 }
 0x4fb   :  { %v400_v30 = vadd.f32 1e-05, %v398_v28 }
 0x4fc   :  { %540 = vrsqrt.f32 %v401_v29 }
 0x4fd   :  { %542 = vrsqrt.f32 %v400_v30 }
 0x506   :  { %v541_v31 = vpop.eup %540 }
 0x507   :  { %v543_v33 = vpop.eup %542  ;;  %v405_v34 = vmul.f32 %v541_v31, %v389_v19 }
 0x508   :  { %v404_v36 = vmul.f32 %v543_v33, %v388_v20 }
 0x509   :  { %v413_v37 = vmul.f32 %v439_v32, %v405_v34 }
 0x50a   :  { %v412_v38 = vmul.f32 %v439_v32, %v404_v36 }
 0x50b   :  { %v421_v39 = vadd.f32 %v440_v35, %v413_v37 }
 0x50c   :  { %v420_v40 = vadd.f32 %v440_v35, %v412_v38 }
 0x50d   :  { %423 = vst.msk [vmem:[%s722_s12 + $0x8] sm:$0xff] %vm56_vm0, %v421_v39 }
 0x50e   :  { %422 = vst.msk [vmem:[%s722_s12] sm:$0xff] %vm56_vm0, %v420_v40 }

</bundles_post_ra>
